<compile_context>
chip_gen: v7x
topology: tpu7x:2x2x1
jax: 0.10.0
libtpu: 0.0.40
codegen_flags: <defaults>
</compile_context>

<pallas_src>
import functools

import jax
import jax.numpy as jnp
from jax.experimental import pallas as pl
from jax.experimental.pallas import tpu as pltpu

_BIG_SQ = 1e30     # squared-distance sentinel for padded reference rows
_BIG_IDX = 2 ** 30  # index sentinel for the argmin tie-break reduction


def _round_up(x, m):
    return (x + m - 1) // m * m


def _nn_kernel(b_ref, a_ref, dist_ref, idx_ref, min_acc, arg_acc, *, tile_m):
    """Nearest-neighbor of query tile `qi` against reference tile `rj`;
    grid axis 2 (rj) is the reduction axis over reference tiles."""
    rj = pl.program_id(2)

    @pl.when(rj == 0)
    def _init():
        min_acc[...] = jnp.full(min_acc.shape, jnp.inf, dtype=min_acc.dtype)
        arg_acc[...] = jnp.zeros(arg_acc.shape, dtype=arg_acc.dtype)

    b_aug = b_ref[0]   # (tile_m, 5): [x, y, z, ||b||^2, 1]      (refs on sublanes)
    a_aug = a_ref[0]   # (5, tile_n): [-2x, -2y, -2z, 1, ||a||^2] (queries on lanes)

    # Squared pairwise distances straight out of the MXU (single K=5 matmul):
    #   sq[r, q] = ||b_r||^2 + ||a_q||^2 - 2 <b_r, a_q>
    sq = jnp.dot(
        b_aug,
        a_aug,
        preferred_element_type=jnp.float32,
        precision=jax.lax.Precision.HIGHEST,
    )
    sq = jnp.maximum(sq, 0.0)  # clamp tiny negative round-off

    # Deferred min/argmin: elementwise running accumulators (pure VPU selects).
    better = sq < min_acc[...]
    arg_acc[...] = jnp.where(better, rj, arg_acc[...])
    min_acc[...] = jnp.where(better, sq, min_acc[...])

    @pl.when(rj == pl.num_programs(2) - 1)
    def _finalize():
        mins = min_acc[...]
        best = jnp.min(mins, axis=0, keepdims=True)                  # (1, tile_n)
        row_in_tile = jax.lax.broadcasted_iota(jnp.int32, mins.shape, 0)
        glob_idx = arg_acc[...] * tile_m + row_in_tile               # global ref index
        cand = jnp.where(mins <= best, glob_idx, jnp.int32(_BIG_IDX))
        best_idx = jnp.min(cand, axis=0, keepdims=True)              # first occurrence
        # Lane-dense stores; replicate across the 8 sublanes of the block so
        # the block stays (8,128)-aligned and the store is unmasked.
        dist_ref[...] = jnp.broadcast_to(jnp.sqrt(best), dist_ref.shape)
        idx_ref[...] = jnp.broadcast_to(best_idx, idx_ref.shape)


def _augment_queries(p, n_padded):
    """(B, N, 3) -> (B, 5, n_padded) with rows [-2x, -2y, -2z, 1, ||p||^2]."""
    B, N, _ = p.shape
    sq_norm = jnp.sum(p * p, axis=-1, keepdims=True)                 # (B, N, 1)
    ones = jnp.ones((B, N, 1), jnp.float32)
    aug = jnp.concatenate([-2.0 * p, ones, sq_norm], axis=-1)        # (B, N, 5)
    aug = jnp.pad(aug, ((0, 0), (0, n_padded - N), (0, 0)))          # zero pads
    return jnp.transpose(aug, (0, 2, 1))                             # (B, 5, Np)


def _augment_refs(p, m_padded):
    """(B, M, 3) -> (B, m_padded, 5) with cols [x, y, z, ||p||^2, 1]; padded
    rows get a huge squared norm so they can never win the min."""
    B, M, _ = p.shape
    sq_norm = jnp.sum(p * p, axis=-1, keepdims=True)                 # (B, M, 1)
    ones = jnp.ones((B, M, 1), jnp.float32)
    aug = jnp.concatenate([p, sq_norm, ones], axis=-1)               # (B, M, 5)
    if m_padded > M:
        pad_row = jnp.array([0.0, 0.0, 0.0, _BIG_SQ, 0.0], jnp.float32)
        pad = jnp.broadcast_to(pad_row, (B, m_padded - M, 5))
        aug = jnp.concatenate([aug, pad], axis=1)
    return aug                                                       # (B, Mp, 5)


def _nearest(a, b, *, tile_n=256, tile_m=2048):
    """dist (B,N) = min_j ||a_i - b_j||, idx (B,N) = argmin_j (first occurrence)."""
    B, N, D = a.shape
    Bb, M, Db = b.shape
    assert D == 3 and Db == 3, "Input points should have 3 dimensions."
    assert Bb == B, "Batch sizes must match."

    a = a.astype(jnp.float32)
    b = b.astype(jnp.float32)

    # Queries on lanes (multiple of 128); references on sublanes (multiple of 8).
    # tile_n is kept moderate so B * (Np // tile_n) stays >= 2 for megacore.
    tile_n = min(tile_n, _round_up(N, 128))
    tile_m = min(tile_m, _round_up(M, 8))
    Np = _round_up(N, tile_n)
    Mp = _round_up(M, tile_m)

    a_aug = _augment_queries(a, Np)   # (B, 5, Np)
    b_aug = _augment_refs(b, Mp)      # (B, Mp, 5)

    grid = (B, Np // tile_n, Mp // tile_m)

    dist8, idx8 = pl.pallas_call(
        functools.partial(_nn_kernel, tile_m=tile_m),
        out_shape=(
            jax.ShapeDtypeStruct((B, 8, Np), jnp.float32),
            jax.ShapeDtypeStruct((B, 8, Np), jnp.int32),
        ),
        grid_spec=pltpu.PrefetchScalarGridSpec(
            num_scalar_prefetch=0,
            grid=grid,
            in_specs=[
                pl.BlockSpec((1, tile_m, 5), lambda bi, qi, rj: (bi, rj, 0)),
                pl.BlockSpec((1, 5, tile_n), lambda bi, qi, rj: (bi, 0, qi)),
            ],
            out_specs=[
                pl.BlockSpec((1, 8, tile_n), lambda bi, qi, rj: (bi, 0, qi)),
                pl.BlockSpec((1, 8, tile_n), lambda bi, qi, rj: (bi, 0, qi)),
            ],
            scratch_shapes=[
                pltpu.VMEM((tile_m, tile_n), jnp.float32),  # running min
                pltpu.VMEM((tile_m, tile_n), jnp.int32),    # running ref-tile idx
            ],
        ),
        compiler_params=pltpu.CompilerParams(
            dimension_semantics=("parallel", "parallel", "arbitrary"),
            vmem_limit_bytes=32 * 1024 * 1024,
        ),
    )(b_aug, a_aug)

    return dist8[:, 0, :N], idx8[:, 0, :N]


def chamfer_3d_dist(xyz1, xyz2, *, tile_n=256, tile_m=2048):
    """Pallas equivalent of chamfer_3DDist.forward -> (dist1, dist2, idx1, idx2)."""
    # TODO(synk): fuse both directions into a single pallas_call (shared distance
    # tiles + persistent per-batch accumulator for the reverse direction) for
    # ~2x less compute and HBM traffic.
    dist1, idx1 = _nearest(xyz1, xyz2, tile_n=tile_n, tile_m=tile_m)
    dist2, idx2 = _nearest(xyz2, xyz1, tile_n=tile_n, tile_m=tile_m)
    return dist1, dist2, idx1, idx2


def _reference(xyz1, xyz2):
    # Pure-JAX reference (torch.cdist(...).min(dim=2)).
    d = jnp.sqrt(
        jnp.maximum(
            jnp.sum((xyz1[:, :, None, :] - xyz2[:, None, :, :]) ** 2, axis=-1), 0.0
        )
    )
    return (
        jnp.min(d, axis=2),
        jnp.min(d, axis=1),
        jnp.argmin(d, axis=2).astype(jnp.int32),
        jnp.argmin(d, axis=1).astype(jnp.int32),
    )


if __name__ == "__main__":
    key = jax.random.PRNGKey(0)
    k1, k2 = jax.random.split(key)
    B, N, M = 2, 256, 128
    xyz1 = jax.random.normal(k1, (B, N, 3), dtype=jnp.float32)
    xyz2 = jax.random.normal(k2, (B, M, 3), dtype=jnp.float32)

    chamfer = jax.jit(chamfer_3d_dist)
    dist1, dist2, idx1, idx2 = chamfer(xyz1, xyz2)
    jax.block_until_ready((dist1, dist2, idx1, idx2))

    r1, r2, ri1, ri2 = _reference(xyz1, xyz2)
    assert dist1.shape == (B, N) and dist2.shape == (B, M)
    assert idx1.shape == (B, N) and idx2.shape == (B, M)
    assert idx1.dtype == jnp.int32 and idx2.dtype == jnp.int32
    assert jnp.allclose(dist1, r1, atol=1e-4), "dist1 mismatch"
    assert jnp.allclose(dist2, r2, atol=1e-4), "dist2 mismatch"
    assert jnp.array_equal(idx1, ri1), "idx1 mismatch"
    assert jnp.array_equal(idx2, ri2), "idx2 mismatch"

    print("KERNEL_OK")
</pallas_src>

<mosaic_0001>
module attributes {stable_mosaic.version = 11 : i64} {
  func.func @_nn_kernel(%arg0: i32, %arg1: i32, %arg2: i32, %arg3: memref<1x256x5xf32, #tpu.memory_space<vmem>>, %arg4: memref<1x5x128xf32, #tpu.memory_space<vmem>>, %arg5: memref<1x8x128xf32, #tpu.memory_space<vmem>>, %arg6: memref<1x8x128xi32, #tpu.memory_space<vmem>>, %arg7: memref<256x128xf32, #tpu.memory_space<vmem>>, %arg8: memref<256x128xi32, #tpu.memory_space<vmem>>) attributes {dimension_semantics = [#tpu.dimension_semantics<parallel>, #tpu.dimension_semantics<parallel>, #tpu.dimension_semantics<arbitrary>], iteration_bounds = array<i64: 2, 1, 1>, scalar_prefetch = 0 : i64, scratch_operands = 2 : i64, tpu.core_type = #tpu.core_type<tc>, window_params = [{transform_indices = @transform_0, window_bounds = array<i64: 1, 256, 5>}, {transform_indices = @transform_1, window_bounds = array<i64: 1, 5, 128>}, {transform_indices = @transform_2, window_bounds = array<i64: 1, 8, 128>}, {transform_indices = @transform_3, window_bounds = array<i64: 1, 8, 128>}]} {
    %c0_i32 = arith.constant 0 : i32
    %0 = arith.cmpi eq, %arg2, %c0_i32 : i32
    %1 = arith.extui %0 : i1 to i32
    %c0_i32_0 = arith.constant 0 : i32
    %2 = arith.cmpi ne, %1, %c0_i32_0 : i32
    scf.if %2 {
      %cst_19 = arith.constant 0x7F800000 : f32
      %22 = vector.broadcast %cst_19 : f32 to vector<256x128xf32>
      %c0_20 = arith.constant 0 : index
      %c0_21 = arith.constant 0 : index
      %23 = vector.load %arg7[%c0_20, %c0_21] : memref<256x128xf32, #tpu.memory_space<vmem>>, vector<256x128xf32>
      tpu.vector_store %arg7[%c0_20, %c0_21], %22 {strides = array<i32>} : memref<256x128xf32, #tpu.memory_space<vmem>>, vector<256x128xf32>,
      %c0_i32_22 = arith.constant 0 : i32
      %24 = vector.broadcast %c0_i32_22 : i32 to vector<256x128xi32>
      %c0_23 = arith.constant 0 : index
      %c0_24 = arith.constant 0 : index
      %25 = vector.load %arg8[%c0_23, %c0_24] : memref<256x128xi32, #tpu.memory_space<vmem>>, vector<256x128xi32>
      tpu.vector_store %arg8[%c0_23, %c0_24], %24 {strides = array<i32>} : memref<256x128xi32, #tpu.memory_space<vmem>>, vector<256x128xi32>,
    } else {
    }
    %c0 = arith.constant 0 : index
    %c0_1 = arith.constant 0 : index
    %c0_2 = arith.constant 0 : index
    %3 = vector.load %arg3[%c0, %c0_1, %c0_2] : memref<1x256x5xf32, #tpu.memory_space<vmem>>, vector<1x256x5xf32>
    %4 = vector.shape_cast %3 : vector<1x256x5xf32> to vector<256x5xf32>
    %c0_3 = arith.constant 0 : index
    %c0_4 = arith.constant 0 : index
    %c0_5 = arith.constant 0 : index
    %5 = vector.load %arg4[%c0_3, %c0_4, %c0_5] : memref<1x5x128xf32, #tpu.memory_space<vmem>>, vector<1x5x128xf32>
    %6 = vector.shape_cast %5 : vector<1x5x128xf32> to vector<5x128xf32>
    %cst = arith.constant dense<0.000000e+00> : vector<256x128xf32>
    %7 = tpu.matmul %4, %6, %cst {dimension_numbers = #tpu.dot_dimension_numbers<[1], [0], [0], [1], [0, 0, 1, 1], [], []>, precision = #tpu.contract_precision<fp32>} : vector<256x5xf32>, vector<5x128xf32>, vector<256x128xf32> -> vector<256x128xf32>
    %cst_6 = arith.constant 0.000000e+00 : f32
    %8 = vector.broadcast %cst_6 : f32 to vector<256x128xf32>
    %9 = arith.maximumf %7, %8 : vector<256x128xf32>
    %c0_7 = arith.constant 0 : index
    %c0_8 = arith.constant 0 : index
    %10 = vector.load %arg7[%c0_7, %c0_8] : memref<256x128xf32, #tpu.memory_space<vmem>>, vector<256x128xf32>
    %11 = arith.cmpf olt, %9, %10 : vector<256x128xf32>
    %c0_9 = arith.constant 0 : index
    %c0_10 = arith.constant 0 : index
    %12 = vector.load %arg8[%c0_9, %c0_10] : memref<256x128xi32, #tpu.memory_space<vmem>>, vector<256x128xi32>
    %13 = vector.broadcast %arg2 : i32 to vector<256x128xi32>
    %14 = arith.select %11, %13, %12 : vector<256x128xi1>, vector<256x128xi32>
    %c0_11 = arith.constant 0 : index
    %c0_12 = arith.constant 0 : index
    %15 = vector.load %arg8[%c0_11, %c0_12] : memref<256x128xi32, #tpu.memory_space<vmem>>, vector<256x128xi32>
    tpu.vector_store %arg8[%c0_11, %c0_12], %14 {strides = array<i32>} : memref<256x128xi32, #tpu.memory_space<vmem>>, vector<256x128xi32>,
    %c0_13 = arith.constant 0 : index
    %c0_14 = arith.constant 0 : index
    %16 = vector.load %arg7[%c0_13, %c0_14] : memref<256x128xf32, #tpu.memory_space<vmem>>, vector<256x128xf32>
    %17 = arith.select %11, %9, %16 : vector<256x128xi1>, vector<256x128xf32>
    %c0_15 = arith.constant 0 : index
    %c0_16 = arith.constant 0 : index
    %18 = vector.load %arg7[%c0_15, %c0_16] : memref<256x128xf32, #tpu.memory_space<vmem>>, vector<256x128xf32>
    tpu.vector_store %arg7[%c0_15, %c0_16], %17 {strides = array<i32>} : memref<256x128xf32, #tpu.memory_space<vmem>>, vector<256x128xf32>,
    %c0_i32_17 = arith.constant 0 : i32
    %19 = arith.cmpi eq, %arg2, %c0_i32_17 : i32
    %20 = arith.extui %19 : i1 to i32
    %c0_i32_18 = arith.constant 0 : i32
    %21 = arith.cmpi ne, %20, %c0_i32_18 : i32
    scf.if %21 {
      %c0_19 = arith.constant 0 : index
      %c0_20 = arith.constant 0 : index
      %22 = vector.load %arg7[%c0_19, %c0_20] : memref<256x128xf32, #tpu.memory_space<vmem>>, vector<256x128xf32>
      %cst_21 = arith.constant dense<0x7F800000> : vector<128xf32>
      %23 = vector.multi_reduction <minimumf>, %22, %cst_21 [0] : vector<256x128xf32> to vector<128xf32>
      %24 = vector.shape_cast %23 : vector<128xf32> to vector<1x128xf32>
      %25 = tpu.iota {dimensions = array<i32: 0>} : vector<256x128xi32>
      %c0_22 = arith.constant 0 : index
      %c0_23 = arith.constant 0 : index
      %26 = vector.load %arg8[%c0_22, %c0_23] : memref<256x128xi32, #tpu.memory_space<vmem>>, vector<256x128xi32>
      %c256_i32 = arith.constant 256 : i32
      %27 = vector.broadcast %c256_i32 : i32 to vector<256x128xi32>
      %28 = arith.muli %26, %27 : vector<256x128xi32>
      %29 = arith.addi %28, %25 : vector<256x128xi32>
      %30 = vector.broadcast %24 : vector<1x128xf32> to vector<256x128xf32>
      %31 = arith.cmpf ole, %22, %30 : vector<256x128xf32>
      %c1073741824_i32 = arith.constant 1073741824 : i32
      %32 = vector.broadcast %c1073741824_i32 : i32 to vector<256x128xi32>
      %33 = arith.select %31, %29, %32 : vector<256x128xi1>, vector<256x128xi32>
      %cst_24 = arith.constant dense<2147483647> : vector<128xi32>
      %34 = vector.multi_reduction <minsi>, %33, %cst_24 [0] : vector<256x128xi32> to vector<128xi32>
      %35 = vector.shape_cast %34 : vector<128xi32> to vector<1x128xi32>
      %36 = math.sqrt %24 : vector<1x128xf32>
      %37 = vector.shape_cast %36 : vector<1x128xf32> to vector<1x1x128xf32>
      %38 = vector.broadcast %37 : vector<1x1x128xf32> to vector<1x8x128xf32>
      %c0_25 = arith.constant 0 : index
      %c0_26 = arith.constant 0 : index
      %c0_27 = arith.constant 0 : index
      %39 = vector.load %arg5[%c0_25, %c0_26, %c0_27] : memref<1x8x128xf32, #tpu.memory_space<vmem>>, vector<1x8x128xf32>
      tpu.vector_store %arg5[%c0_25, %c0_26, %c0_27], %38 {strides = array<i32>} : memref<1x8x128xf32, #tpu.memory_space<vmem>>, vector<1x8x128xf32>,
      %40 = vector.shape_cast %35 : vector<1x128xi32> to vector<1x1x128xi32>
      %41 = vector.broadcast %40 : vector<1x1x128xi32> to vector<1x8x128xi32>
      %c0_28 = arith.constant 0 : index
      %c0_29 = arith.constant 0 : index
      %c0_30 = arith.constant 0 : index
      %42 = vector.load %arg6[%c0_28, %c0_29, %c0_30] : memref<1x8x128xi32, #tpu.memory_space<vmem>>, vector<1x8x128xi32>
      tpu.vector_store %arg6[%c0_28, %c0_29, %c0_30], %41 {strides = array<i32>} : memref<1x8x128xi32, #tpu.memory_space<vmem>>, vector<1x8x128xi32>,
    } else {
    }
    return
  }
  func.func @transform_0(%arg0: i32, %arg1: i32, %arg2: i32) -> (i32, i32, i32) {
    %c0_i32 = arith.constant 0 : i32
    %c0_i32_0 = arith.constant 0 : i32
    return %arg0, %arg2, %c0_i32 : i32, i32, i32
  }
  func.func @transform_1(%arg0: i32, %arg1: i32, %arg2: i32) -> (i32, i32, i32) {
    %c0_i32 = arith.constant 0 : i32
    %c0_i32_0 = arith.constant 0 : i32
    return %arg0, %c0_i32, %arg1 : i32, i32, i32
  }
  func.func @transform_2(%arg0: i32, %arg1: i32, %arg2: i32) -> (i32, i32, i32) {
    %c0_i32 = arith.constant 0 : i32
    %c0_i32_0 = arith.constant 0 : i32
    return %arg0, %c0_i32, %arg1 : i32, i32, i32
  }
  func.func @transform_3(%arg0: i32, %arg1: i32, %arg2: i32) -> (i32, i32, i32) {
    %c0_i32 = arith.constant 0 : i32
    %c0_i32_0 = arith.constant 0 : i32
    return %arg0, %c0_i32, %arg1 : i32, i32, i32
  }
}

module attributes {stable_mosaic.version = 11 : i64} {
  func.func @_nn_kernel(%arg0: i32, %arg1: i32, %arg2: i32, %arg3: memref<1x128x5xf32, #tpu.memory_space<vmem>>, %arg4: memref<1x5x256xf32, #tpu.memory_space<vmem>>, %arg5: memref<1x8x256xf32, #tpu.memory_space<vmem>>, %arg6: memref<1x8x256xi32, #tpu.memory_space<vmem>>, %arg7: memref<128x256xf32, #tpu.memory_space<vmem>>, %arg8: memref<128x256xi32, #tpu.memory_space<vmem>>) attributes {dimension_semantics = [#tpu.dimension_semantics<parallel>, #tpu.dimension_semantics<parallel>, #tpu.dimension_semantics<arbitrary>], iteration_bounds = array<i64: 2, 1, 1>, scalar_prefetch = 0 : i64, scratch_operands = 2 : i64, tpu.core_type = #tpu.core_type<tc>, window_params = [{transform_indices = @transform_0, window_bounds = array<i64: 1, 128, 5>}, {transform_indices = @transform_1, window_bounds = array<i64: 1, 5, 256>}, {transform_indices = @transform_2, window_bounds = array<i64: 1, 8, 256>}, {transform_indices = @transform_3, window_bounds = array<i64: 1, 8, 256>}]} {
    %c0_i32 = arith.constant 0 : i32
    %0 = arith.cmpi eq, %arg2, %c0_i32 : i32
    %1 = arith.extui %0 : i1 to i32
    %c0_i32_0 = arith.constant 0 : i32
    %2 = arith.cmpi ne, %1, %c0_i32_0 : i32
    scf.if %2 {
      %cst_19 = arith.constant 0x7F800000 : f32
      %22 = vector.broadcast %cst_19 : f32 to vector<128x256xf32>
      %c0_20 = arith.constant 0 : index
      %c0_21 = arith.constant 0 : index
      %23 = vector.load %arg7[%c0_20, %c0_21] : memref<128x256xf32, #tpu.memory_space<vmem>>, vector<128x256xf32>
      tpu.vector_store %arg7[%c0_20, %c0_21], %22 {strides = array<i32>} : memref<128x256xf32, #tpu.memory_space<vmem>>, vector<128x256xf32>,
      %c0_i32_22 = arith.constant 0 : i32
      %24 = vector.broadcast %c0_i32_22 : i32 to vector<128x256xi32>
      %c0_23 = arith.constant 0 : index
      %c0_24 = arith.constant 0 : index
      %25 = vector.load %arg8[%c0_23, %c0_24] : memref<128x256xi32, #tpu.memory_space<vmem>>, vector<128x256xi32>
      tpu.vector_store %arg8[%c0_23, %c0_24], %24 {strides = array<i32>} : memref<128x256xi32, #tpu.memory_space<vmem>>, vector<128x256xi32>,
    } else {
    }
    %c0 = arith.constant 0 : index
    %c0_1 = arith.constant 0 : index
    %c0_2 = arith.constant 0 : index
    %3 = vector.load %arg3[%c0, %c0_1, %c0_2] : memref<1x128x5xf32, #tpu.memory_space<vmem>>, vector<1x128x5xf32>
    %4 = vector.shape_cast %3 : vector<1x128x5xf32> to vector<128x5xf32>
    %c0_3 = arith.constant 0 : index
    %c0_4 = arith.constant 0 : index
    %c0_5 = arith.constant 0 : index
    %5 = vector.load %arg4[%c0_3, %c0_4, %c0_5] : memref<1x5x256xf32, #tpu.memory_space<vmem>>, vector<1x5x256xf32>
    %6 = vector.shape_cast %5 : vector<1x5x256xf32> to vector<5x256xf32>
    %cst = arith.constant dense<0.000000e+00> : vector<128x256xf32>
    %7 = tpu.matmul %4, %6, %cst {dimension_numbers = #tpu.dot_dimension_numbers<[1], [0], [0], [1], [0, 0, 1, 1], [], []>, precision = #tpu.contract_precision<fp32>} : vector<128x5xf32>, vector<5x256xf32>, vector<128x256xf32> -> vector<128x256xf32>
    %cst_6 = arith.constant 0.000000e+00 : f32
    %8 = vector.broadcast %cst_6 : f32 to vector<128x256xf32>
    %9 = arith.maximumf %7, %8 : vector<128x256xf32>
    %c0_7 = arith.constant 0 : index
    %c0_8 = arith.constant 0 : index
    %10 = vector.load %arg7[%c0_7, %c0_8] : memref<128x256xf32, #tpu.memory_space<vmem>>, vector<128x256xf32>
    %11 = arith.cmpf olt, %9, %10 : vector<128x256xf32>
    %c0_9 = arith.constant 0 : index
    %c0_10 = arith.constant 0 : index
    %12 = vector.load %arg8[%c0_9, %c0_10] : memref<128x256xi32, #tpu.memory_space<vmem>>, vector<128x256xi32>
    %13 = vector.broadcast %arg2 : i32 to vector<128x256xi32>
    %14 = arith.select %11, %13, %12 : vector<128x256xi1>, vector<128x256xi32>
    %c0_11 = arith.constant 0 : index
    %c0_12 = arith.constant 0 : index
    %15 = vector.load %arg8[%c0_11, %c0_12] : memref<128x256xi32, #tpu.memory_space<vmem>>, vector<128x256xi32>
    tpu.vector_store %arg8[%c0_11, %c0_12], %14 {strides = array<i32>} : memref<128x256xi32, #tpu.memory_space<vmem>>, vector<128x256xi32>,
    %c0_13 = arith.constant 0 : index
    %c0_14 = arith.constant 0 : index
    %16 = vector.load %arg7[%c0_13, %c0_14] : memref<128x256xf32, #tpu.memory_space<vmem>>, vector<128x256xf32>
    %17 = arith.select %11, %9, %16 : vector<128x256xi1>, vector<128x256xf32>
    %c0_15 = arith.constant 0 : index
    %c0_16 = arith.constant 0 : index
    %18 = vector.load %arg7[%c0_15, %c0_16] : memref<128x256xf32, #tpu.memory_space<vmem>>, vector<128x256xf32>
    tpu.vector_store %arg7[%c0_15, %c0_16], %17 {strides = array<i32>} : memref<128x256xf32, #tpu.memory_space<vmem>>, vector<128x256xf32>,
    %c0_i32_17 = arith.constant 0 : i32
    %19 = arith.cmpi eq, %arg2, %c0_i32_17 : i32
    %20 = arith.extui %19 : i1 to i32
    %c0_i32_18 = arith.constant 0 : i32
    %21 = arith.cmpi ne, %20, %c0_i32_18 : i32
    scf.if %21 {
      %c0_19 = arith.constant 0 : index
      %c0_20 = arith.constant 0 : index
      %22 = vector.load %arg7[%c0_19, %c0_20] : memref<128x256xf32, #tpu.memory_space<vmem>>, vector<128x256xf32>
      %cst_21 = arith.constant dense<0x7F800000> : vector<256xf32>
      %23 = vector.multi_reduction <minimumf>, %22, %cst_21 [0] : vector<128x256xf32> to vector<256xf32>
      %24 = vector.shape_cast %23 : vector<256xf32> to vector<1x256xf32>
      %25 = tpu.iota {dimensions = array<i32: 0>} : vector<128x256xi32>
      %c0_22 = arith.constant 0 : index
      %c0_23 = arith.constant 0 : index
      %26 = vector.load %arg8[%c0_22, %c0_23] : memref<128x256xi32, #tpu.memory_space<vmem>>, vector<128x256xi32>
      %c128_i32 = arith.constant 128 : i32
      %27 = vector.broadcast %c128_i32 : i32 to vector<128x256xi32>
      %28 = arith.muli %26, %27 : vector<128x256xi32>
      %29 = arith.addi %28, %25 : vector<128x256xi32>
      %30 = vector.broadcast %24 : vector<1x256xf32> to vector<128x256xf32>
      %31 = arith.cmpf ole, %22, %30 : vector<128x256xf32>
      %c1073741824_i32 = arith.constant 1073741824 : i32
      %32 = vector.broadcast %c1073741824_i32 : i32 to vector<128x256xi32>
      %33 = arith.select %31, %29, %32 : vector<128x256xi1>, vector<128x256xi32>
      %cst_24 = arith.constant dense<2147483647> : vector<256xi32>
      %34 = vector.multi_reduction <minsi>, %33, %cst_24 [0] : vector<128x256xi32> to vector<256xi32>
      %35 = vector.shape_cast %34 : vector<256xi32> to vector<1x256xi32>
      %36 = math.sqrt %24 : vector<1x256xf32>
      %37 = vector.shape_cast %36 : vector<1x256xf32> to vector<1x1x256xf32>
      %38 = vector.broadcast %37 : vector<1x1x256xf32> to vector<1x8x256xf32>
      %c0_25 = arith.constant 0 : index
      %c0_26 = arith.constant 0 : index
      %c0_27 = arith.constant 0 : index
      %39 = vector.load %arg5[%c0_25, %c0_26, %c0_27] : memref<1x8x256xf32, #tpu.memory_space<vmem>>, vector<1x8x256xf32>
      tpu.vector_store %arg5[%c0_25, %c0_26, %c0_27], %38 {strides = array<i32>} : memref<1x8x256xf32, #tpu.memory_space<vmem>>, vector<1x8x256xf32>,
      %40 = vector.shape_cast %35 : vector<1x256xi32> to vector<1x1x256xi32>
      %41 = vector.broadcast %40 : vector<1x1x256xi32> to vector<1x8x256xi32>
      %c0_28 = arith.constant 0 : index
      %c0_29 = arith.constant 0 : index
      %c0_30 = arith.constant 0 : index
      %42 = vector.load %arg6[%c0_28, %c0_29, %c0_30] : memref<1x8x256xi32, #tpu.memory_space<vmem>>, vector<1x8x256xi32>
      tpu.vector_store %arg6[%c0_28, %c0_29, %c0_30], %41 {strides = array<i32>} : memref<1x8x256xi32, #tpu.memory_space<vmem>>, vector<1x8x256xi32>,
    } else {
    }
    return
  }
  func.func @transform_0(%arg0: i32, %arg1: i32, %arg2: i32) -> (i32, i32, i32) {
    %c0_i32 = arith.constant 0 : i32
    %c0_i32_0 = arith.constant 0 : i32
    return %arg0, %arg2, %c0_i32 : i32, i32, i32
  }
  func.func @transform_1(%arg0: i32, %arg1: i32, %arg2: i32) -> (i32, i32, i32) {
    %c0_i32 = arith.constant 0 : i32
    %c0_i32_0 = arith.constant 0 : i32
    return %arg0, %c0_i32, %arg1 : i32, i32, i32
  }
  func.func @transform_2(%arg0: i32, %arg1: i32, %arg2: i32) -> (i32, i32, i32) {
    %c0_i32 = arith.constant 0 : i32
    %c0_i32_0 = arith.constant 0 : i32
    return %arg0, %c0_i32, %arg1 : i32, i32, i32
  }
  func.func @transform_3(%arg0: i32, %arg1: i32, %arg2: i32) -> (i32, i32, i32) {
    %c0_i32 = arith.constant 0 : i32
    %c0_i32_0 = arith.constant 0 : i32
    return %arg0, %c0_i32, %arg1 : i32, i32, i32
  }
}

</mosaic_0001>

<bundles_post_ra>
// kernel: chamfer_3d_dist.3
= control target key start
LH: loop header
LB: loop body
LE: loop exit
PB: predicated region body
PF: predicated region fallthrough
CT: control target
= control target key end

     0   :  { %s3751_s12 = smov 0   ;;  %s3753_s13 = smov 0   ;;  %s4619_s0 = inlined_call_operand.vmem [shape: f32[2,256,5], index: 0, kind: input, shape index: {}]   ;;  %s4620_s1 = inlined_call_operand.vmem [shape: f32[2,5,128], index: 1, kind: input, shape index: {}]   ;;  %s4621_s2 = inlined_call_operand.vmem [shape: f32[2,8,128], index: 2, kind: output, shape index: {0}]   ;;  %s4622_s3 = inlined_call_operand.vmem [shape: s32[2,8,128], index: 3, kind: output, shape index: {1}]  }
   0x1   :  { %s3755_s14 = smov 0  }
   0x2 LB: > { %s33_s15 = sadd.s32 1, %s3725_s13  ;;  %p3014_p0 = scmp.ge.s32.totalorder %s3729_s14, 1  ;;  %s3729_s14 = sphi %s3755_s14, %s14_s14   ;;  %s3725_s13 = sphi %s3753_s13, %s4705_s13   ;;  %s3721_s12 = sphi %s3751_s12, %s4704_s12  }
   0x3   : > { %p35_p1 = scmp.ge.s32.totalorder %s33_s15, 2  ;;  %p184_p2 = scmp.lt.s32.totalorder %s3729_s14, 3 }
   0x5   : > { %s4707_s15 = smov (%p35_p1, %s33_s15), 0  ;;  %p185_p3 = pnand %p3014_p0, %p184_p2 }
   0x7   : > { %188 = sbr.rel (%p185_p3) target bundleno = 505 (0x1f9), region = 28 }
   0xe   : > { %p229_p4 = scmp.lt.s32.totalorder %s3721_s12, 1  ;;  %vm457_vm0 = vcmask 1044480   ;;  %vm360_vm1 = vcmask 39936  }
  0x10   : > { %s4709_s12 = smov (!%p229_p4, %s3721_s12), 1 }
  0x11   : > { %s3022_s16 = sshll.u32 %s4709_s12, 8  ;;  %s3769_s17 = sshll.u32 %s4709_s12, 3 }
  0x12   : > { %s3774_s20 = scalar_lea.vmem %s4619_s0, %s3022_s16  ;;  %s244_s23 = scalar_lea.vmem %s4620_s1, %s3769_s17 }
  0x13   : > { %v359_v0 = vld [vmem:[%s244_s23] sm:$0x1f]  ;;  %v328_v2 = vld [vmem:[%s3774_s20 + $0x8] sm:$0xff]  ;;  %v329_v6 = vld [vmem:[%s3774_s20 + $0x10] sm:$0xff]  ;;  %s251_s26 = scalar_lea.vmem %s4621_s2, %s3769_s17  ;;  %s258_s29 = scalar_lea.vmem %s4622_s3, %s3769_s17 }
  0x14   : > { %v327_v1 = vld [vmem:[%s3774_s20] sm:$0xff]  ;;  %v459_v3 = vsel %vm457_vm0, %v359_v0, 0  ;;  %v365_v5 = vsel %vm360_vm1, %v328_v2, 0  ;;  %v330_v7 = vld [vmem:[%s3774_s20 + $0x18] sm:$0xff]  ;;  %v368_v12 = vsel %vm360_vm1, %v329_v6, 0  ;;  %v332_v13 = vld [vmem:[%s3774_s20 + $0x28] sm:$0xff] }
  0x15   : > { %v362_v4 = vsel %vm360_vm1, %v327_v1, 0  ;;  %v331_v8 = vld [vmem:[%s3774_s20 + $0x20] sm:$0xff]  ;;  %v3787_v9 = vand.u32 4294901760, %v459_v3  ;;  %v3791_v11 = vand.u32 4294901760, %v365_v5  ;;  %v333_v14 = vld [vmem:[%s3774_s20 + $0x30] sm:$0xff]  ;;  %v3796_v15 = vand.u32 4294901760, %v368_v12 }
  0x16   : > { %v3789_v10 = vand.u32 4294901760, %v362_v4  ;;  %v371_v16 = vsel %vm360_vm1, %v330_v7, 0  ;;  %v374_v17 = vsel %vm360_vm1, %v331_v8, 0  ;;  %v377_v18 = vsel %vm360_vm1, %v332_v13, 0  ;;  %v334_v43 = vld [vmem:[%s3774_s20 + $0x38] sm:$0xff]  ;;  %v335_v44 = vld [vmem:[%s3774_s20 + $0x40] sm:$0xff] }
  0x17   : > { %3371 = vmatprep.subr.mxu0 %v3787_v9  ;;  %v3806_v20 = vsub.f32 %v365_v5, %v3791_v11  ;;  %3221 = vmatprep.subr.mxu1 %v3787_v9  ;;  %v3810_v21 = vsub.f32 %v459_v3, %v3787_v9  ;;  %v3812_v22 = vand.u32 4294901760, %v371_v16  ;;  %v3817_v23 = vsub.f32 %v368_v12, %v3796_v15  ;;  %v336_v45 = vld [vmem:[%s3774_s20 + $0x48] sm:$0xff]  ;;  %v337_v54 = vld [vmem:[%s3774_s20 + $0x50] sm:$0xff]  ;;  %v338_v55 = vld [vmem:[%s3774_s20 + $0x58] sm:$0xff] }
  0x18   : > { %v3803_v19 = vsub.f32 %v362_v4, %v3789_v10  ;;  %3372 = vmatpush3.msra.mxu0 %v3787_v9  ;;  %3222 = vmatpush3.msra.mxu1 %v3787_v9  ;;  %v3819_v24 = vand.u32 4294901760, %v374_v17  ;;  %v3821_v25 = vand.u32 4294901760, %v377_v18  ;;  %v380_v26 = vsel %vm360_vm1, %v333_v14, 0  ;;  %v339_v0 = vld [vmem:[%s3774_s20 + $0x60] sm:$0xff]  ;;  %v340_v1 = vld [vmem:[%s3774_s20 + $0x68] sm:$0xff]  ;;  %v341_v13 = vld [vmem:[%s3774_s20 + $0x70] sm:$0xff] }
  0x19   : > { %v539_v28 = vand.u32 4294901760, %v3806_v20  ;;  %v850_v29 = vand.u32 4294901760, %v3810_v21  ;;  %v3828_v30 = vsub.f32 %v371_v16, %v3812_v22  ;;  %v549_v31 = vand.u32 4294901760, %v3817_v23 }
  0x1a   : > { %v529_v27 = vand.u32 4294901760, %v3803_v19  ;;  %v3832_v32 = vsub.f32 %v374_v17, %v3819_v24  ;;  %v3835_v33 = vsub.f32 %v377_v18, %v3821_v25  ;;  %v3837_v34 = vand.u32 4294901760, %v380_v26 }
  0x1b   : > { %v851_v36 = vsub.f32 %v3810_v21, %v850_v29  ;;  %3421 = vmatprep.subr.mxu0 %v850_v29  ;;  %v540_v37 = vsub.f32 %v3806_v20, %v539_v28  ;;  %v559_v38 = vand.u32 4294901760, %v3828_v30  ;;  %v550_v39 = vsub.f32 %v3817_v23, %v549_v31 }
  0x1c   : > { %3373 = vmatprep.mubr.f32.mxu0 %v529_v27  ;;  %v530_v35 = vsub.f32 %v3803_v19, %v529_v27  ;;  %v569_v40 = vand.u32 4294901760, %v3832_v32  ;;  %v579_v41 = vand.u32 4294901760, %v3835_v33  ;;  %v3847_v42 = vsub.f32 %v380_v26, %v3837_v34 }
  0x1d   : > { %3374 = vmatmul.mubr.f32.vlgmr.msra.gmra.mrb[0].mxu0 %v539_v28  ;;  %v852_v47 = vand.u32 4294901760, %v851_v36  ;;  %v541_v48 = vand.u32 4294901760, %v540_v37  ;;  %v560_v49 = vsub.f32 %v3828_v30, %v559_v38  ;;  %v551_v50 = vand.u32 4294901760, %v550_v39 }
  0x1e   : > { %v531_v46 = vand.u32 4294901760, %v530_v35  ;;  %3376 = vmatprep.mubr.f32.mxu0 %v549_v31  ;;  %3422 = vmatpush3.msra.mxu0 %v850_v29  ;;  %v570_v51 = vsub.f32 %v3832_v32, %v569_v40  ;;  %v589_v52 = vand.u32 4294901760, %v3847_v42  ;;  %v580_v53 = vsub.f32 %v3835_v33, %v579_v41 }
  0x1f   : > { %3471 = vmatprep.subr.mxu0 %v3787_v9  ;;  %3271 = vmatprep.subr.mxu1 %v852_v47  ;;  %v561_v56 = vand.u32 4294901760, %v560_v49  ;;  %v383_v57 = vsel %vm360_vm1, %v334_v43, 0  ;;  %v386_v58 = vsel %vm360_vm1, %v335_v44, 0  ;;  %v389_v59 = vsel %vm360_vm1, %v336_v45, 0  ;;  %v343_v49 = vld [vmem:[%s3774_s20 + $0x80] sm:$0xff] }
  0x20   : > { %3223 = vmatprep.mubr.f32.mxu1 %v531_v46  ;;  %v571_v60 = vand.u32 4294901760, %v570_v51  ;;  %v581_v61 = vand.u32 4294901760, %v580_v53  ;;  %v3862_v62 = vand.u32 4294901760, %v383_v57  ;;  %v590_v63 = vsub.f32 %v3847_v42, %v589_v52  ;;  %v342_v46 = vld [vmem:[%s3774_s20 + $0x78] sm:$0xff] }
  0x21   : > { %3224 = vmatmul.mubr.f32.vlgmr.msra.gmra.mrb[0].mxu1 %v541_v48  ;;  %3377 = vmatmul.mubr.f32.gmra.mrb[2].mxu0 %v559_v38  ;;  %v3867_v2 = vand.u32 4294901760, %v386_v58  ;;  %v3869_v3 = vand.u32 4294901760, %v389_v59  ;;  %v392_v4 = vsel %vm360_vm1, %v337_v54, 0  ;;  %v395_v5 = vsel %vm360_vm1, %v338_v55, 0  ;;  %v344_v54 = vld [vmem:[%s3774_s20 + $0x88] sm:$0xff]  ;;  %v345_v55 = vld [vmem:[%s3774_s20 + $0x90] sm:$0xff] }
  0x22   : > { %3272 = vmatpush3.msra.mxu1 %v852_v47  ;;  %3226 = vmatprep.mubr.f32.mxu1 %v551_v50  ;;  %v3874_v6 = vsub.f32 %v383_v57, %v3862_v62  ;;  %v591_v7 = vand.u32 4294901760, %v590_v63  ;;  %v3876_v8 = vand.u32 4294901760, %v392_v4  ;;  %v3878_v12 = vand.u32 4294901760, %v395_v5  ;;  %v346_v63 = vld [vmem:[%s3774_s20 + $0x98] sm:$0xff] }
  0x23   : > { %3379 = vmatprep.mubr.f32.mxu0 %v569_v40  ;;  %3321 = vmatprep.subr.mxu1 %v3810_v21  ;;  %v3883_v14 = vsub.f32 %v386_v58, %v3867_v2  ;;  %v3886_v16 = vsub.f32 %v389_v59, %v3869_v3  ;;  %v398_v17 = vsel %vm360_vm1, %v339_v0, 0  ;;  %v401_v18 = vsel %vm360_vm1, %v340_v1, 0  ;;  %v347_v0 = vld [vmem:[%s3774_s20 + $0xa0] sm:$0xff] }
  0x24   : > { %4642 = vst [vmem:[#allocation4_spill] sm:$0xff] %v3874_v6  ;;  %v599_v26 = vand.u32 4294901760, %v3874_v6  ;;  %v3892_v27 = vsub.f32 %v392_v4, %v3876_v8  ;;  %v3895_v28 = vsub.f32 %v395_v5, %v3878_v12  ;;  %v3897_v29 = vand.u32 4294901760, %v398_v17 }
  0x25   : > { %4643 = vst [vmem:[#allocation5_spill] sm:$0xff] %v3883_v14  ;;  %4644 = vst [vmem:[#allocation6_spill] sm:$0xff] %v3886_v16  ;;  %3227 = vmatmul.mubr.f32.gmra.mrb[2].mxu1 %v561_v56  ;;  %3380 = vmatmul.mubr.f32.gmra.mrb[4].mxu0 %v579_v41  ;;  %v609_v31 = vand.u32 4294901760, %v3883_v14  ;;  %v619_v35 = vand.u32 4294901760, %v3886_v16  ;;  %v3901_v36 = vand.u32 4294901760, %v401_v18  ;;  %v404_v37 = vsel %vm360_vm1, %v341_v13, 0 }
  0x26   : > { %4645 = vst [vmem:[#allocation7_spill] sm:$0xff] %v3892_v27  ;;  %4646 = vst [vmem:[#allocation8_spill] sm:$0xff] %v3895_v28  ;;  %3229 = vmatprep.mubr.f32.mxu1 %v571_v60  ;;  %3382 = vmatprep.mubr.f32.mxu0 %v589_v52  ;;  %v600_v38 = vsub.f32 %v3874_v6, %v599_v26  ;;  %v629_v39 = vand.u32 4294901760, %v3892_v27  ;;  %v639_v40 = vand.u32 4294901760, %v3895_v28  ;;  %v3914_v45 = vand.u32 4294901760, %v404_v37 }
  0x27   : > { %v3908_v41 = vsub.f32 %v398_v17, %v3897_v29  ;;  %v610_v43 = vsub.f32 %v3883_v14, %v609_v31  ;;  %v3912_v44 = vsub.f32 %v401_v18, %v3901_v36  ;;  %v620_v48 = vsub.f32 %v3886_v16, %v619_v35  ;;  %v357_v14 = vld [vmem:[%s3774_s20 + $0xf0] sm:$0xff] }
  0x28   : > { %v601_v47 = vand.u32 4294901760, %v600_v38  ;;  %v630_v51 = vsub.f32 %v3892_v27, %v629_v39  ;;  %v3922_v53 = vsub.f32 %v404_v37, %v3914_v45  ;;  %v640_v56 = vsub.f32 %v3895_v28, %v639_v40 }
  0x29   : > { %4647 = vst [vmem:[#allocation9_spill] sm:$0xff] %v3908_v41  ;;  %4648 = vst [vmem:[#allocation10_spill] sm:$0xff] %v3912_v44  ;;  %3230 = vmatmul.mubr.f32.gmra.mrb[4].mxu1 %v581_v61  ;;  %3383 = vmatmul.mubr.f32.gmra.mrb[6].mxu0 %v599_v26  ;;  %v611_v50 = vand.u32 4294901760, %v610_v43  ;;  %v649_v52 = vand.u32 4294901760, %v3908_v41  ;;  %v407_v57 = vsel %vm360_vm1, %v342_v46, 0  ;;  %v659_v58 = vand.u32 4294901760, %v3912_v44 }
  0x2a   : > { %3232 = vmatprep.mubr.f32.mxu1 %v591_v7  ;;  %3385 = vmatprep.mubr.f32.mxu0 %v609_v31  ;;  %4649 = vst [vmem:[#allocation11_spill] sm:$0xff] %v3922_v53  ;;  %v669_v59 = vand.u32 4294901760, %v3922_v53  ;;  %v3930_v60 = vand.u32 4294901760, %v407_v57  ;;  %v410_v61 = vsel %vm360_vm1, %v343_v49, 0  ;;  %v621_v1 = vand.u32 4294901760, %v620_v48  ;;  %v348_v31 = vld [vmem:[%s3774_s20 + $0xa8] sm:$0xff] }
  0x2b   : > { %v3935_v4 = vand.u32 4294901760, %v410_v61  ;;  %v413_v5 = vsel %vm360_vm1, %v344_v54, 0  ;;  %v416_v7 = vsel %vm360_vm1, %v345_v55, 0  ;;  %v631_v13 = vand.u32 4294901760, %v630_v51  ;;  %v349_v48 = vld [vmem:[%s3774_s20 + $0xb0] sm:$0xff] }
  0x2c   : > { %v650_v17 = vsub.f32 %v3908_v41, %v649_v52  ;;  %v3941_v18 = vsub.f32 %v407_v57, %v3930_v60  ;;  %v3943_v26 = vand.u32 4294901760, %v413_v5  ;;  %v3949_v37 = vand.u32 4294901760, %v416_v7 }
  0x2d   : > { %3233 = vmatmul.mubr.f32.gmra.mrb[6].mxu1 %v601_v47  ;;  %3386 = vmatmul.mubr.f32.gmra.mrb[8].mxu0 %v619_v35  ;;  %v3947_v35 = vsub.f32 %v410_v61, %v3935_v4  ;;  %v419_v38 = vsel %vm360_vm1, %v346_v63, 0  ;;  %v422_v43 = vsel %vm360_vm1, %v347_v0, 0  ;;  %v641_v46 = vand.u32 4294901760, %v640_v56  ;;  %v350_v63 = vld [vmem:[%s3774_s20 + $0xb8] sm:$0xff] }
  0x2e   : > { %3235 = vmatprep.mubr.f32.mxu1 %v611_v50  ;;  %3388 = vmatprep.mubr.f32.mxu0 %v629_v39  ;;  %4650 = vst [vmem:[#allocation12_spill] sm:$0xff] %v3941_v18  ;;  %v660_v39 = vsub.f32 %v3912_v44, %v659_v58  ;;  %v670_v47 = vsub.f32 %v3922_v53, %v669_v59  ;;  %v679_v49 = vand.u32 4294901760, %v3941_v18  ;;  %v3960_v51 = vand.u32 4294901760, %v419_v38 }
  0x2f   : > { %4651 = vst [vmem:[#allocation13_spill] sm:$0xff] %v3947_v35  ;;  %v3958_v50 = vsub.f32 %v413_v5, %v3943_v26  ;;  %v425_v54 = vsel %vm360_vm1, %v348_v31, 0  ;;  %v651_v55 = vand.u32 4294901760, %v650_v17  ;;  %v689_v56 = vand.u32 4294901760, %v3947_v35  ;;  %v351_v31 = vld [vmem:[%s3774_s20 + $0xc0] sm:$0xff] }
  0x30   : > { %v3965_v57 = vsub.f32 %v416_v7, %v3949_v37  ;;  %v3967_v61 = vand.u32 4294901760, %v422_v43  ;;  %v661_v0 = vand.u32 4294901760, %v660_v39  ;;  %v3971_v5 = vand.u32 4294901760, %v425_v54 }
  0x31   : > { %3236 = vmatmul.mubr.f32.gmra.mrb[8].mxu1 %v621_v1  ;;  %3389 = vmatmul.mubr.f32.gmra.mrb[10].mxu0 %v639_v40  ;;  %4652 = vst [vmem:[#allocation14_spill] sm:$0xff] %v3958_v50  ;;  %v428_v40 = vsel %vm360_vm1, %v349_v48, 0  ;;  %v671_v1 = vand.u32 4294901760, %v670_v47  ;;  %v3976_v7 = vsub.f32 %v419_v38, %v3960_v51  ;;  %v690_v39 = vsub.f32 %v3947_v35, %v689_v56  ;;  %v352_v48 = vld [vmem:[%s3774_s20 + $0xc8] sm:$0xff] }
  0x32   : > { %3238 = vmatprep.mubr.f32.mxu1 %v631_v13  ;;  %3391 = vmatprep.mubr.f32.mxu0 %v649_v52  ;;  %4653 = vst [vmem:[#allocation15_spill] sm:$0xff] %v3965_v57  ;;  %v680_v52 = vsub.f32 %v3941_v18, %v679_v49  ;;  %v699_v13 = vand.u32 4294901760, %v3958_v50  ;;  %v3978_v17 = vand.u32 4294901760, %v428_v40  ;;  %v709_v47 = vand.u32 4294901760, %v3965_v57 }
  0x33   : > { %4654 = vst [vmem:[#allocation16_spill] sm:$0xff] %v3976_v7  ;;  %v3989_v18 = vsub.f32 %v425_v54, %v3971_v5  ;;  %v691_v54 = vand.u32 4294901760, %v690_v39 }
  0x34   : > { %v3992_v38 = vsub.f32 %v428_v40, %v3978_v17  ;;  %v700_v35 = vsub.f32 %v3958_v50, %v699_v13  ;;  %v710_v40 = vsub.f32 %v3965_v57, %v709_v47 }
  0x35   : > { %3239 = vmatmul.mubr.f32.gmra.mrb[10].mxu1 %v641_v46  ;;  %3392 = vmatmul.mubr.f32.gmra.mrb[12].mxu0 %v659_v58  ;;  %v3984_v46 = vsub.f32 %v422_v43, %v3967_v61  ;;  %v431_v58 = vsel %vm360_vm1, %v350_v63, 0  ;;  %4656 = vst [vmem:[#allocation18_spill] sm:$0xff] %v3989_v18  ;;  %v681_v43 = vand.u32 4294901760, %v680_v52  ;;  %v719_v63 = vand.u32 4294901760, %v3976_v7 }
  0x36   : > { %3241 = vmatprep.mubr.f32.mxu1 %v651_v55  ;;  %3394 = vmatprep.mubr.f32.mxu0 %v669_v59  ;;  %4657 = vst [vmem:[#allocation19_spill] sm:$0xff] %v3992_v38  ;;  %v3994_v53 = vand.u32 4294901760, %v431_v58  ;;  %v434_v59 = vsel %vm360_vm1, %v351_v31, 0  ;;  %v353_v55 = vld [vmem:[%s3774_s20 + $0xd0] sm:$0xff]  ;;  %v437_v31 = vsel %vm360_vm1, %v352_v48, 0  ;;  %v739_v52 = vand.u32 4294901760, %v3989_v18 }
  0x37   : > { %4655 = vst [vmem:[#allocation17_spill] sm:$0xff] %v3984_v46  ;;  %v4000_v44 = vand.u32 4294901760, %v434_v59  ;;  %v729_v41 = vand.u32 4294901760, %v3984_v46  ;;  %v749_v50 = vand.u32 4294901760, %v3992_v38  ;;  %v720_v39 = vsub.f32 %v3976_v7, %v719_v63 }
  0x38   : > { %v4010_v28 = vsub.f32 %v431_v58, %v3994_v53  ;;  %v711_v57 = vand.u32 4294901760, %v710_v40 }
  0x39   : > { %3242 = vmatmul.mubr.f32.gmra.mrb[12].mxu1 %v661_v0  ;;  %3395 = vmatmul.mubr.f32.gmra.mrb[14].mxu0 %v679_v49  ;;  %v440_v0 = vsel %vm360_vm1, %v353_v55, 0  ;;  %v354_v49 = vld [vmem:[%s3774_s20 + $0xd8] sm:$0xff]  ;;  %v4015_v48 = vsub.f32 %v434_v59, %v4000_v44  ;;  %v4017_v55 = vand.u32 4294901760, %v437_v31  ;;  %v730_v27 = vsub.f32 %v3984_v46, %v729_v41 }
  0x3a   : > { %3244 = vmatprep.mubr.f32.mxu1 %v671_v1  ;;  %3397 = vmatprep.mubr.f32.mxu0 %v689_v56  ;;  %4658 = vst [vmem:[#allocation20_spill] sm:$0xff] %v4010_v28  ;;  %v355_v1 = vld [vmem:[%s3774_s20 + $0xe0] sm:$0xff]  ;;  %v701_v56 = vand.u32 4294901760, %v700_v35  ;;  %v4020_v16 = vand.u32 4294901760, %v440_v0  ;;  %v443_v58 = vsel %vm360_vm1, %v354_v49, 0  ;;  %v740_v35 = vsub.f32 %v3989_v18, %v739_v52 }
  0x3b   : > { %4659 = vst [vmem:[#allocation21_spill] sm:$0xff] %v4015_v48  ;;  %v759_v7 = vand.u32 4294901760, %v4010_v28  ;;  %v750_v59 = vsub.f32 %v3992_v38, %v749_v50  ;;  %v4031_v40 = vsub.f32 %v437_v31, %v4017_v55  ;;  %v4033_v49 = vand.u32 4294901760, %v443_v58 }
  0x3c   : > { %v4036_v18 = vsub.f32 %v440_v0, %v4020_v16 }
  0x3d   : > { %3245 = vmatmul.mubr.f32.gmra.mrb[14].mxu1 %v681_v43  ;;  %3398 = vmatmul.mubr.f32.gmra.mrb[16].mxu0 %v699_v13  ;;  %v446_v13 = vsel %vm360_vm1, %v355_v1, 0  ;;  %v356_v43 = vld [vmem:[%s3774_s20 + $0xe8] sm:$0xff]  ;;  %v731_v1 = vand.u32 4294901760, %v730_v27  ;;  %v751_v6 = vand.u32 4294901760, %v750_v59  ;;  %v760_v31 = vsub.f32 %v4010_v28, %v759_v7 }
  0x3e   : > { %3247 = vmatprep.mubr.f32.mxu1 %v691_v54  ;;  %3400 = vmatprep.mubr.f32.mxu0 %v709_v47  ;;  %v721_v47 = vand.u32 4294901760, %v720_v39  ;;  %v769_v54 = vand.u32 4294901760, %v4015_v48  ;;  %v4038_v46 = vand.u32 4294901760, %v446_v13  ;;  %v449_v38 = vsel %vm360_vm1, %v356_v43, 0 }
  0x3f   : > { %v741_v39 = vand.u32 4294901760, %v740_v35  ;;  %v4049_v0 = vand.u32 4294901760, %v449_v38  ;;  %v761_v59 = vand.u32 4294901760, %v760_v31 }
  0x40   : > { %v770_v27 = vsub.f32 %v4015_v48, %v769_v54  ;;  %v4053_v43 = vsub.f32 %v446_v13, %v4038_v46 }
  0x41   : > { %3248 = vmatmul.mubr.f32.gmra.mrb[16].mxu1 %v701_v56  ;;  %3401 = vmatmul.mubr.f32.gmra.mrb[18].mxu0 %v719_v63  ;;  %v452_v63 = vsel %vm360_vm1, %v357_v14, 0  ;;  %v358_v56 = vld [vmem:[%s3774_s20 + $0xf8] sm:$0xff]  ;;  %v789_v14 = vand.u32 4294901760, %v4036_v18  ;;  %v4061_v48 = vsub.f32 %v449_v38, %v4049_v0 }
  0x42   : > { %3250 = vmatprep.mubr.f32.mxu1 %v711_v57  ;;  %3403 = vmatprep.mubr.f32.mxu0 %v729_v41  ;;  %v779_v57 = vand.u32 4294901760, %v4031_v40  ;;  %v4047_v41 = vsub.f32 %v443_v58, %v4033_v49  ;;  %v4055_v35 = vand.u32 4294901760, %v452_v63  ;;  %v771_v13 = vand.u32 4294901760, %v770_v27 }
  0x43   : > { %v809_v28 = vand.u32 4294901760, %v4053_v43  ;;  %v819_v38 = vand.u32 4294901760, %v4061_v48 }
  0x44   : > { %v799_v58 = vand.u32 4294901760, %v4047_v41 }
  0x45   : > { %3251 = vmatmul.mubr.f32.gmra.mrb[18].mxu1 %v721_v47  ;;  %3404 = vmatmul.mubr.f32.gmra.mrb[20].mxu0 %v739_v52  ;;  %v455_v52 = vsel %vm360_vm1, %v358_v56, 0  ;;  %v780_v47 = vsub.f32 %v4031_v40, %v779_v57  ;;  %v4068_v56 = vsub.f32 %v452_v63, %v4055_v35 }
  0x46   : > { %3253 = vmatprep.mubr.f32.mxu1 %v731_v1  ;;  %3406 = vmatprep.mubr.f32.mxu0 %v749_v50  ;;  %v4063_v50 = vand.u32 4294901760, %v455_v52  ;;  %v790_v1 = vsub.f32 %v4036_v18, %v789_v14 }
  0x47   : > { %v829_v27 = vand.u32 4294901760, %v4068_v56 }
  0x48   : > { %v4073_v31 = vsub.f32 %v455_v52, %v4063_v50 }
  0x49   : > { %3254 = vmatmul.mubr.f32.gmra.mrb[20].mxu1 %v741_v39  ;;  %3407 = vmatmul.mubr.f32.gmra.mrb[22].mxu0 %v759_v7  ;;  %v781_v7 = vand.u32 4294901760, %v780_v47  ;;  %v800_v39 = vsub.f32 %v4047_v41, %v799_v58  ;;  %v830_v52 = vsub.f32 %v4068_v56, %v829_v27 }
  0x4a   : > { %3256 = vmatprep.mubr.f32.mxu1 %v751_v6  ;;  %3409 = vmatprep.mubr.f32.mxu0 %v769_v54  ;;  %v791_v6 = vand.u32 4294901760, %v790_v1  ;;  %v810_v54 = vsub.f32 %v4053_v43, %v809_v28 }
  0x4b   : > { %v801_v63 = vand.u32 4294901760, %v800_v39  ;;  %v831_v1 = vand.u32 4294901760, %v830_v52 }
  0x4c   : > { %v811_v47 = vand.u32 4294901760, %v810_v54 }
  0x4d   : > { %3257 = vmatmul.mubr.f32.gmra.mrb[22].mxu1 %v761_v59  ;;  %3410 = vmatmul.mubr.f32.gmra.mrb[24].mxu0 %v779_v57  ;;  %v820_v57 = vsub.f32 %v4061_v48, %v819_v38  ;;  %v839_v59 = vand.u32 4294901760, %v4073_v31 }
  0x4e   : > { %3259 = vmatprep.mubr.f32.mxu1 %v771_v13  ;;  %3412 = vmatprep.mubr.f32.mxu0 %v789_v14 }
  0x4f   : > { %v821_v14 = vand.u32 4294901760, %v820_v57  ;;  %v840_v13 = vsub.f32 %v4073_v31, %v839_v59 }
  0x51   : > { %3260 = vmatmul.mubr.f32.gmra.mrb[24].mxu1 %v781_v7  ;;  %3413 = vmatmul.mubr.f32.gmra.mrb[26].mxu0 %v799_v58  ;;  %v841_v58 = vand.u32 4294901760, %v840_v13 }
  0x52   : > { %3262 = vmatprep.mubr.f32.mxu1 %v791_v6  ;;  %3415 = vmatprep.mubr.f32.mxu0 %v809_v28 }
  0x55   : > { %3263 = vmatmul.mubr.f32.gmra.mrb[26].mxu1 %v801_v63  ;;  %3416 = vmatmul.mubr.f32.gmra.mrb[28].mxu0 %v819_v38 }
  0x56   : > { %3265 = vmatprep.mubr.f32.mxu1 %v811_v47  ;;  %3418 = vmatprep.mubr.f32.mxu0 %v829_v27 }
  0x59   : > { %3266 = vmatmul.mubr.f32.gmra.mrb[28].mxu1 %v821_v14  ;;  %3419 = vmatmul.mubr.f32.gmra.mrb[30].mxu0 %v839_v59 }
  0x5a   : > { %3268 = vmatprep.mubr.f32.mxu1 %v831_v1  ;;  %3423 = vmatprep.mubr.f32.mxu0 %v3789_v10 }
  0x5d   : > { %3269 = vmatmul.mubr.f32.gmra.mrb[30].mxu1 %v841_v58  ;;  %3424 = vmatmul.mubr.f32.vlgmr.msra.gmra.mrb[0].mxu0 %v3791_v11 }
  0x5e   : > { %3273 = vmatprep.mubr.f32.mxu1 %v3789_v10  ;;  %3426 = vmatprep.mubr.f32.mxu0 %v3796_v15 }
  0x5f   : > { %3472 = vmatpush3.msra.mxu0 %v3787_v9  ;;  %v4660_v9 = vld [vmem:[#allocation4_spill] sm:$0xff] }
  0x61   : > { %3274 = vmatmul.mubr.f32.vlgmr.msra.gmra.mrb[0].mxu1 %v3791_v11  ;;  %3427 = vmatmul.mubr.f32.gmra.mrb[2].mxu0 %v3812_v22 }
  0x62   : > { %3322 = vmatpush3.msra.mxu1 %v3810_v21  ;;  %3276 = vmatprep.mubr.f32.mxu1 %v3796_v15  ;;  %v4666_v21 = vld [vmem:[#allocation10_spill] sm:$0xff] }
  0x63   : > { %3429 = vmatprep.mubr.f32.mxu0 %v3819_v24 }
  0x65   : > { %3277 = vmatmul.mubr.f32.gmra.mrb[2].mxu1 %v3812_v22  ;;  %3430 = vmatmul.mubr.f32.gmra.mrb[4].mxu0 %v3821_v25 }
  0x66   : > { %3279 = vmatprep.mubr.f32.mxu1 %v3819_v24  ;;  %3432 = vmatprep.mubr.f32.mxu0 %v3837_v34 }
  0x69   : > { %3280 = vmatmul.mubr.f32.gmra.mrb[4].mxu1 %v3821_v25  ;;  %3433 = vmatmul.mubr.f32.gmra.mrb[6].mxu0 %v3862_v62 }
  0x6a   : > { %3282 = vmatprep.mubr.f32.mxu1 %v3837_v34  ;;  %3435 = vmatprep.mubr.f32.mxu0 %v3867_v2 }
  0x6d   : > { %3283 = vmatmul.mubr.f32.gmra.mrb[6].mxu1 %v3862_v62  ;;  %3436 = vmatmul.mubr.f32.gmra.mrb[8].mxu0 %v3869_v3 }
  0x6e   : > { %3285 = vmatprep.mubr.f32.mxu1 %v3867_v2  ;;  %3438 = vmatprep.mubr.f32.mxu0 %v3876_v8 }
  0x71   : > { %3286 = vmatmul.mubr.f32.gmra.mrb[8].mxu1 %v3869_v3  ;;  %3439 = vmatmul.mubr.f32.gmra.mrb[10].mxu0 %v3878_v12 }
  0x72   : > { %3288 = vmatprep.mubr.f32.mxu1 %v3876_v8  ;;  %3441 = vmatprep.mubr.f32.mxu0 %v3897_v29 }
  0x75   : > { %3289 = vmatmul.mubr.f32.gmra.mrb[10].mxu1 %v3878_v12  ;;  %3442 = vmatmul.mubr.f32.gmra.mrb[12].mxu0 %v3901_v36 }
  0x76   : > { %3291 = vmatprep.mubr.f32.mxu1 %v3897_v29  ;;  %3444 = vmatprep.mubr.f32.mxu0 %v3914_v45 }
  0x79   : > { %3292 = vmatmul.mubr.f32.gmra.mrb[12].mxu1 %v3901_v36  ;;  %3445 = vmatmul.mubr.f32.gmra.mrb[14].mxu0 %v3930_v60 }
  0x7a   : > { %3294 = vmatprep.mubr.f32.mxu1 %v3914_v45  ;;  %3447 = vmatprep.mubr.f32.mxu0 %v3935_v4 }
  0x7d   : > { %3295 = vmatmul.mubr.f32.gmra.mrb[14].mxu1 %v3930_v60  ;;  %3448 = vmatmul.mubr.f32.gmra.mrb[16].mxu0 %v3943_v26 }
  0x7e   : > { %3297 = vmatprep.mubr.f32.mxu1 %v3935_v4  ;;  %3450 = vmatprep.mubr.f32.mxu0 %v3949_v37 }
  0x81   : > { %3298 = vmatmul.mubr.f32.gmra.mrb[16].mxu1 %v3943_v26  ;;  %3451 = vmatmul.mubr.f32.gmra.mrb[18].mxu0 %v3960_v51 }
  0x82   : > { %3300 = vmatprep.mubr.f32.mxu1 %v3949_v37  ;;  %3453 = vmatprep.mubr.f32.mxu0 %v3967_v61 }
  0x85   : > { %3301 = vmatmul.mubr.f32.gmra.mrb[18].mxu1 %v3960_v51  ;;  %3454 = vmatmul.mubr.f32.gmra.mrb[20].mxu0 %v3971_v5 }
  0x86   : > { %3303 = vmatprep.mubr.f32.mxu1 %v3967_v61  ;;  %3456 = vmatprep.mubr.f32.mxu0 %v3978_v17 }
  0x89   : > { %3304 = vmatmul.mubr.f32.gmra.mrb[20].mxu1 %v3971_v5  ;;  %3457 = vmatmul.mubr.f32.gmra.mrb[22].mxu0 %v3994_v53 }
  0x8a   : > { %3306 = vmatprep.mubr.f32.mxu1 %v3978_v17  ;;  %3459 = vmatprep.mubr.f32.mxu0 %v4000_v44 }
  0x8d   : > { %3307 = vmatmul.mubr.f32.gmra.mrb[22].mxu1 %v3994_v53  ;;  %3460 = vmatmul.mubr.f32.gmra.mrb[24].mxu0 %v4017_v55 }
  0x8e   : > { %3309 = vmatprep.mubr.f32.mxu1 %v4000_v44  ;;  %3462 = vmatprep.mubr.f32.mxu0 %v4020_v16 }
  0x91   : > { %3310 = vmatmul.mubr.f32.gmra.mrb[24].mxu1 %v4017_v55  ;;  %3463 = vmatmul.mubr.f32.gmra.mrb[26].mxu0 %v4033_v49 }
  0x92   : > { %3312 = vmatprep.mubr.f32.mxu1 %v4020_v16  ;;  %3465 = vmatprep.mubr.f32.mxu0 %v4038_v46 }
  0x95   : > { %3313 = vmatmul.mubr.f32.gmra.mrb[26].mxu1 %v4033_v49  ;;  %3466 = vmatmul.mubr.f32.gmra.mrb[28].mxu0 %v4049_v0 }
  0x96   : > { %3315 = vmatprep.mubr.f32.mxu1 %v4038_v46  ;;  %3468 = vmatprep.mubr.f32.mxu0 %v4055_v35 }
  0x99   : > { %3316 = vmatmul.mubr.f32.gmra.mrb[28].mxu1 %v4049_v0  ;;  %3469 = vmatmul.mubr.f32.gmra.mrb[30].mxu0 %v4063_v50 }
  0x9a   : > { %3318 = vmatprep.mubr.f32.mxu1 %v4055_v35  ;;  %3473 = vmatprep.mubr.f32.mxu0 %v3789_v10  ;;  %v4661_v10 = vld [vmem:[#allocation5_spill] sm:$0xff] }
  0x9d   : > { %3319 = vmatmul.mubr.f32.gmra.mrb[30].mxu1 %v4063_v50  ;;  %3474 = vmatmul.mubr.f32.vlgmr.msra.gmra.mrb[0].mxu0 %v3791_v11  ;;  %v4662_v11 = vld [vmem:[#allocation6_spill] sm:$0xff] }
  0x9e   : > { %3323 = vmatprep.mubr.f32.mxu1 %v3803_v19  ;;  %3476 = vmatprep.mubr.f32.mxu0 %v3796_v15  ;;  %v4663_v15 = vld [vmem:[#allocation7_spill] sm:$0xff]  ;;  %v4664_v19 = vld [vmem:[#allocation8_spill] sm:$0xff] }
  0xa1   : > { %3324 = vmatmul.mubr.f32.vlgmr.msra.gmra.mrb[0].mxu1 %v3806_v20  ;;  %3477 = vmatmul.mubr.f32.gmra.mrb[2].mxu0 %v3812_v22  ;;  %v4665_v20 = vld [vmem:[#allocation9_spill] sm:$0xff]  ;;  %v4667_v22 = vld [vmem:[#allocation11_spill] sm:$0xff] }
  0xa2   : > { %3326 = vmatprep.mubr.f32.mxu1 %v3817_v23  ;;  %3479 = vmatprep.mubr.f32.mxu0 %v3819_v24  ;;  %v4668_v23 = vld [vmem:[#allocation12_spill] sm:$0xff]  ;;  %v4669_v24 = vld [vmem:[#allocation13_spill] sm:$0xff] }
  0xa5   : > { %3327 = vmatmul.mubr.f32.gmra.mrb[2].mxu1 %v3828_v30  ;;  %3480 = vmatmul.mubr.f32.gmra.mrb[4].mxu0 %v3821_v25  ;;  %v4670_v25 = vld [vmem:[#allocation14_spill] sm:$0xff]  ;;  %v4671_v30 = vld [vmem:[#allocation15_spill] sm:$0xff] }
  0xa6   : > { %3329 = vmatprep.mubr.f32.mxu1 %v3832_v32  ;;  %3482 = vmatprep.mubr.f32.mxu0 %v3837_v34  ;;  %v4672_v32 = vld [vmem:[#allocation16_spill] sm:$0xff]  ;;  %v4674_v34 = vld [vmem:[#allocation18_spill] sm:$0xff] }
  0xa9   : > { %3330 = vmatmul.mubr.f32.gmra.mrb[4].mxu1 %v3835_v33  ;;  %3483 = vmatmul.mubr.f32.gmra.mrb[6].mxu0 %v3862_v62  ;;  %v4673_v33 = vld [vmem:[#allocation17_spill] sm:$0xff]  ;;  %v4676_v62 = vld [vmem:[#allocation20_spill] sm:$0xff] }
  0xaa   : > { %3332 = vmatprep.mubr.f32.mxu1 %v3847_v42  ;;  %3485 = vmatprep.mubr.f32.mxu0 %v3867_v2  ;;  %v4675_v42 = vld [vmem:[#allocation19_spill] sm:$0xff]  ;;  %v4677_v2 = vld [vmem:[#allocation21_spill] sm:$0xff] }
  0xad   : > { %3333 = vmatmul.mubr.f32.gmra.mrb[6].mxu1 %v4660_v9  ;;  %3486 = vmatmul.mubr.f32.gmra.mrb[8].mxu0 %v3869_v3 }
  0xae   : > { %3335 = vmatprep.mubr.f32.mxu1 %v4661_v10  ;;  %3488 = vmatprep.mubr.f32.mxu0 %v3876_v8 }
  0xb1   : > { %3336 = vmatmul.mubr.f32.gmra.mrb[8].mxu1 %v4662_v11  ;;  %3489 = vmatmul.mubr.f32.gmra.mrb[10].mxu0 %v3878_v12 }
  0xb2   : > { %3338 = vmatprep.mubr.f32.mxu1 %v4663_v15  ;;  %3491 = vmatprep.mubr.f32.mxu0 %v3897_v29 }
  0xb5   : > { %3339 = vmatmul.mubr.f32.gmra.mrb[10].mxu1 %v4664_v19  ;;  %3492 = vmatmul.mubr.f32.gmra.mrb[12].mxu0 %v3901_v36 }
  0xb6   : > { %3341 = vmatprep.mubr.f32.mxu1 %v4665_v20  ;;  %3494 = vmatprep.mubr.f32.mxu0 %v3914_v45 }
  0xb9   : > { %3342 = vmatmul.mubr.f32.gmra.mrb[12].mxu1 %v4666_v21  ;;  %3495 = vmatmul.mubr.f32.gmra.mrb[14].mxu0 %v3930_v60 }
  0xba   : > { %3344 = vmatprep.mubr.f32.mxu1 %v4667_v22  ;;  %3497 = vmatprep.mubr.f32.mxu0 %v3935_v4 }
  0xbd   : > { %3345 = vmatmul.mubr.f32.gmra.mrb[14].mxu1 %v4668_v23  ;;  %3498 = vmatmul.mubr.f32.gmra.mrb[16].mxu0 %v3943_v26 }
  0xbe   : > { %3347 = vmatprep.mubr.f32.mxu1 %v4669_v24  ;;  %3500 = vmatprep.mubr.f32.mxu0 %v3949_v37 }
  0xc1   : > { %3348 = vmatmul.mubr.f32.gmra.mrb[16].mxu1 %v4670_v25  ;;  %3501 = vmatmul.mubr.f32.gmra.mrb[18].mxu0 %v3960_v51 }
  0xc2   : > { %3350 = vmatprep.mubr.f32.mxu1 %v4671_v30  ;;  %3503 = vmatprep.mubr.f32.mxu0 %v3967_v61 }
  0xc5   : > { %3351 = vmatmul.mubr.f32.gmra.mrb[18].mxu1 %v4672_v32  ;;  %3504 = vmatmul.mubr.f32.gmra.mrb[20].mxu0 %v3971_v5 }
  0xc6   : > { %3353 = vmatprep.mubr.f32.mxu1 %v4673_v33  ;;  %3506 = vmatprep.mubr.f32.mxu0 %v3978_v17 }
  0xc9   : > { %3354 = vmatmul.mubr.f32.gmra.mrb[20].mxu1 %v4674_v34  ;;  %3507 = vmatmul.mubr.f32.gmra.mrb[22].mxu0 %v3994_v53 }
  0xca   : > { %3356 = vmatprep.mubr.f32.mxu1 %v4675_v42  ;;  %3509 = vmatprep.mubr.f32.mxu0 %v4000_v44 }
  0xcd   : > { %3357 = vmatmul.mubr.f32.gmra.mrb[22].mxu1 %v4676_v62  ;;  %3510 = vmatmul.mubr.f32.gmra.mrb[24].mxu0 %v4017_v55 }
  0xce   : > { %3359 = vmatprep.mubr.f32.mxu1 %v4677_v2  ;;  %3512 = vmatprep.mubr.f32.mxu0 %v4020_v16 }
  0xd1   : > { %3360 = vmatmul.mubr.f32.gmra.mrb[24].mxu1 %v4031_v40  ;;  %3513 = vmatmul.mubr.f32.gmra.mrb[26].mxu0 %v4033_v49 }
  0xd2   : > { %3362 = vmatprep.mubr.f32.mxu1 %v4036_v18  ;;  %3515 = vmatprep.mubr.f32.mxu0 %v4038_v46 }
  0xd5   : > { %3363 = vmatmul.mubr.f32.gmra.mrb[26].mxu1 %v4047_v41  ;;  %3516 = vmatmul.mubr.f32.gmra.mrb[28].mxu0 %v4049_v0 }
  0xd6   : > { %3365 = vmatprep.mubr.f32.mxu1 %v4053_v43  ;;  %3518 = vmatprep.mubr.f32.mxu0 %v4055_v35 }
  0xd9   : > { %3366 = vmatmul.mubr.f32.gmra.mrb[28].mxu1 %v4061_v48  ;;  %3519 = vmatmul.mubr.f32.gmra.mrb[30].mxu0 %v4063_v50 }
  0xda   : > { %3368 = vmatprep.mubr.f32.mxu1 %v4068_v56 }
  0xdd   : > { %3369 = vmatmul.mubr.f32.gmra.mrb[30].mxu1 %v4073_v31 }
 0x170   : > { %v3475_v3 = vpop.f32.mrb[0].mxu0 }
 0x171   : > { %v2050_v8 = vpop.f32.mrb[1].mxu0 }
 0x174   : > { %v3325_v12 = vpop.f32.mrb[0].mxu1  ;;  %v3478_v16 = vpop.f32.mrb[2].mxu0 }
 0x175   : > { %v3521_v28 = vadd.f32 %v3475_v3, %v3325_v12  ;;  %v1179_v29 = vpop.f32.mrb[1].mxu1  ;;  %v2062_v36 = vpop.f32.mrb[3].mxu0 }
 0x176   : > { %v3522_v44 = vadd.f32 %v2050_v8, %v1179_v29 }
 0x177   : > { %v2241_v26 = vmax.f32 %v3521_v28, 0.0 }
 0x178   : > { %v3328_v45 = vpop.f32.mrb[2].mxu1  ;;  %v3481_v53 = vpop.f32.mrb[4].mxu0  ;;  %v2240_v51 = vmax.f32 %v3522_v44, 0.0 }
 0x179   : > { %v3523_v60 = vadd.f32 %v3478_v16, %v3328_v45  ;;  %v1193_v4 = vpop.f32.mrb[3].mxu1  ;;  %v2074_v18 = vpop.f32.mrb[5].mxu0  ;;  %vm2305_vm2 = vcmp.lt.f32.partialorder %v2241_v26, inf }
 0x17a   : > { %v3524_v37 = vadd.f32 %v2062_v36, %v1193_v4  ;;  %vm2304_vm3 = vcmp.lt.f32.partialorder %v2240_v51, inf  ;;  %v4211_v50 = vsel %vm2305_vm2, %v2241_v26, inf }
 0x17b   : > { %v2243_v40 = vmax.f32 %v3523_v60, 0.0  ;;  %v4213_v38 = vsel %vm2304_vm3, %v2240_v51, inf }
 0x17c   : > { %v3331_v61 = vpop.f32.mrb[4].mxu1  ;;  %v3484_v5 = vpop.f32.mrb[6].mxu0  ;;  %v2242_v41 = vmax.f32 %v3524_v37, 0.0 }
 0x17d   : > { %v3525_v17 = vadd.f32 %v3481_v53, %v3331_v61  ;;  %v1207_v46 = vpop.f32.mrb[5].mxu1  ;;  %v2086_v48 = vpop.f32.mrb[7].mxu0  ;;  %vm2307_vm6 = vcmp.lt.f32.partialorder %v2243_v40, inf }
 0x17e   : > { %v3526_v55 = vadd.f32 %v2074_v18, %v1207_v46  ;;  %vm2306_vm7 = vcmp.lt.f32.partialorder %v2242_v41, inf  ;;  %v4223_v58 = vsel %vm2307_vm6, %v2243_v40, inf }
 0x17f   : > { %v2245_v49 = vmax.f32 %v3525_v17, 0.0  ;;  %v4227_v11 = vsel %vm2306_vm7, %v2242_v41, inf }
 0x180   : > { %v2244_v0 = vmax.f32 %v3526_v55, 0.0  ;;  %v3334_v43 = vpop.f32.mrb[6].mxu1  ;;  %v3487_v35 = vpop.f32.mrb[8].mxu0 }
 0x181   : > { %vm2309_vm4 = vcmp.lt.f32.partialorder %v2245_v49, inf  ;;  %v3527_v56 = vadd.f32 %v3484_v5, %v3334_v43  ;;  %v1221_v7 = vpop.f32.mrb[7].mxu1  ;;  %v2098_v39 = vpop.f32.mrb[9].mxu0 }
 0x182   : > { %v4215_v31 = vsel %vm2309_vm4, %v2245_v49, inf  ;;  %vm2308_vm5 = vcmp.lt.f32.partialorder %v2244_v0, inf  ;;  %v3528_v6 = vadd.f32 %v2086_v48, %v1221_v7 }
 0x183   : > { %v2565_v54 = vmin.f32 %v4211_v50, %v4215_v31  ;;  %v4219_v27 = vsel %vm2308_vm5, %v2244_v0, inf  ;;  %v2247_v63 = vmax.f32 %v3527_v56, 0.0 }
 0x184   : > { %v2564_v57 = vmin.f32 %v4213_v38, %v4219_v27  ;;  %v2246_v59 = vmax.f32 %v3528_v6, 0.0  ;;  %v3337_v47 = vpop.f32.mrb[8].mxu1  ;;  %v3490_v52 = vpop.f32.mrb[10].mxu0 }
 0x185   : > { %vm2311_vm8 = vcmp.lt.f32.partialorder %v2247_v63, inf  ;;  %v3529_v14 = vadd.f32 %v3487_v35, %v3337_v47  ;;  %v1235_v13 = vpop.f32.mrb[9].mxu1  ;;  %v2110_v1 = vpop.f32.mrb[11].mxu0 }
 0x186   : > { %v4225_v9 = vsel %vm2311_vm8, %v2247_v63, inf  ;;  %vm2310_vm9 = vcmp.lt.f32.partialorder %v2246_v59, inf  ;;  %v3530_v10 = vadd.f32 %v2098_v39, %v1235_v13 }
 0x187   : > { %v2567_v15 = vmin.f32 %v4223_v58, %v4225_v9  ;;  %v4231_v19 = vsel %vm2310_vm9, %v2246_v59, inf  ;;  %v2249_v20 = vmax.f32 %v3529_v14, 0.0 }
 0x188   : > { %v2566_v21 = vmin.f32 %v4227_v11, %v4231_v19  ;;  %v2248_v22 = vmax.f32 %v3530_v10, 0.0  ;;  %v3340_v23 = vpop.f32.mrb[10].mxu1  ;;  %v3493_v24 = vpop.f32.mrb[12].mxu0 }
 0x189   : > { %vm2313_vm10 = vcmp.lt.f32.partialorder %v2249_v20, inf  ;;  %v3531_v25 = vadd.f32 %v3490_v52, %v3340_v23  ;;  %v1249_v30 = vpop.f32.mrb[11].mxu1  ;;  %v2122_v32 = vpop.f32.mrb[13].mxu0 }
 0x18a   : > { %v4235_v33 = vsel %vm2313_vm10, %v2249_v20, inf  ;;  %vm2312_vm11 = vcmp.lt.f32.partialorder %v2248_v22, inf  ;;  %v3532_v34 = vadd.f32 %v2110_v1, %v1249_v30 }
 0x18b   : > { %v2569_v42 = vmin.f32 %v2565_v54, %v4235_v33  ;;  %v4238_v62 = vsel %vm2312_vm11, %v2248_v22, inf  ;;  %v2251_v2 = vmax.f32 %v3531_v25, 0.0 }
 0x18c   : > { %v2568_v3 = vmin.f32 %v2564_v57, %v4238_v62  ;;  %v2250_v8 = vmax.f32 %v3532_v34, 0.0  ;;  %v3343_v12 = vpop.f32.mrb[12].mxu1  ;;  %v3496_v16 = vpop.f32.mrb[14].mxu0 }
 0x18d   : > { %vm2315_vm12 = vcmp.lt.f32.partialorder %v2251_v2, inf  ;;  %v3533_v28 = vadd.f32 %v3493_v24, %v3343_v12  ;;  %v1263_v29 = vpop.f32.mrb[13].mxu1  ;;  %v2134_v36 = vpop.f32.mrb[15].mxu0 }
 0x18e   : > { %v4241_v44 = vsel %vm2315_vm12, %v2251_v2, inf  ;;  %vm2314_vm13 = vcmp.lt.f32.partialorder %v2250_v8, inf  ;;  %v3534_v45 = vadd.f32 %v2122_v32, %v1263_v29 }
 0x18f   : > { %v2571_v53 = vmin.f32 %v2567_v15, %v4241_v44  ;;  %v4244_v60 = vsel %vm2314_vm13, %v2250_v8, inf  ;;  %v2253_v4 = vmax.f32 %v3533_v28, 0.0 }
 0x190   : > { %v2570_v18 = vmin.f32 %v2566_v21, %v4244_v60  ;;  %v2252_v26 = vmax.f32 %v3534_v45, 0.0  ;;  %v3346_v37 = vpop.f32.mrb[14].mxu1  ;;  %v3499_v51 = vpop.f32.mrb[16].mxu0 }
 0x191   : > { %vm2317_vm14 = vcmp.lt.f32.partialorder %v2253_v4, inf  ;;  %v3535_v61 = vadd.f32 %v3496_v16, %v3346_v37  ;;  %v1277_v5 = vpop.f32.mrb[15].mxu1  ;;  %v2146_v17 = vpop.f32.mrb[17].mxu0 }
 0x192   : > { %v4247_v46 = vsel %vm2317_vm14, %v2253_v4, inf  ;;  %vm2316_vm15 = vcmp.lt.f32.partialorder %v2252_v26, inf  ;;  %v3536_v48 = vadd.f32 %v2134_v36, %v1277_v5 }
 0x193   : > { %v2573_v55 = vmin.f32 %v2569_v42, %v4247_v46  ;;  %v4250_v40 = vsel %vm2316_vm15, %v2252_v26, inf  ;;  %v2255_v49 = vmax.f32 %v3535_v61, 0.0 }
 0x194   : > { %v2572_v41 = vmin.f32 %v2568_v3, %v4250_v40  ;;  %v2254_v0 = vmax.f32 %v3536_v48, 0.0  ;;  %v3349_v43 = vpop.f32.mrb[16].mxu1  ;;  %v3502_v35 = vpop.f32.mrb[18].mxu0 }
 0x195   : > { %vm2319_vm0 = vcmp.lt.f32.partialorder %v2255_v49, inf  ;;  %v3537_v56 = vadd.f32 %v3499_v51, %v3349_v43  ;;  %v1291_v7 = vpop.f32.mrb[17].mxu1  ;;  %v2158_v39 = vpop.f32.mrb[19].mxu0 }
 0x196   : > { %v4253_v6 = vsel %vm2319_vm0, %v2255_v49, inf  ;;  %vm2318_vm1 = vcmp.lt.f32.partialorder %v2254_v0, inf  ;;  %v3538_v54 = vadd.f32 %v2146_v17, %v1291_v7 }
 0x197   : > { %v2575_v63 = vmin.f32 %v2571_v53, %v4253_v6  ;;  %v4256_v57 = vsel %vm2318_vm1, %v2254_v0, inf  ;;  %v2257_v59 = vmax.f32 %v3537_v56, 0.0 }
 0x198   : > { %v2574_v47 = vmin.f32 %v2570_v18, %v4256_v57  ;;  %v2256_v52 = vmax.f32 %v3538_v54, 0.0  ;;  %v3352_v14 = vpop.f32.mrb[18].mxu1  ;;  %v3505_v13 = vpop.f32.mrb[20].mxu0 }
 0x199   : > { %vm2321_vm2 = vcmp.lt.f32.partialorder %v2257_v59, inf  ;;  %v3539_v1 = vadd.f32 %v3502_v35, %v3352_v14  ;;  %v1305_v10 = vpop.f32.mrb[19].mxu1  ;;  %v2170_v15 = vpop.f32.mrb[21].mxu0 }
 0x19a   : > { %v4259_v20 = vsel %vm2321_vm2, %v2257_v59, inf  ;;  %vm2320_vm3 = vcmp.lt.f32.partialorder %v2256_v52, inf  ;;  %v3540_v21 = vadd.f32 %v2158_v39, %v1305_v10 }
 0x19b   : > { %v2577_v22 = vmin.f32 %v2573_v55, %v4259_v20  ;;  %v4262_v23 = vsel %vm2320_vm3, %v2256_v52, inf  ;;  %v2259_v24 = vmax.f32 %v3539_v1, 0.0 }
 0x19c   : > { %v2576_v25 = vmin.f32 %v2572_v41, %v4262_v23  ;;  %v2258_v30 = vmax.f32 %v3540_v21, 0.0  ;;  %v3355_v32 = vpop.f32.mrb[20].mxu1  ;;  %v3508_v34 = vpop.f32.mrb[22].mxu0 }
 0x19d   : > { %vm2323_vm4 = vcmp.lt.f32.partialorder %v2259_v24, inf  ;;  %v3541_v42 = vadd.f32 %v3505_v13, %v3355_v32  ;;  %v1319_v2 = vpop.f32.mrb[21].mxu1  ;;  %v2182_v3 = vpop.f32.mrb[23].mxu0 }
 0x19e   : > { %v4265_v8 = vsel %vm2323_vm4, %v2259_v24, inf  ;;  %vm2322_vm5 = vcmp.lt.f32.partialorder %v2258_v30, inf  ;;  %v3542_v12 = vadd.f32 %v2170_v15, %v1319_v2 }
 0x19f   : > { %v2579_v16 = vmin.f32 %v2575_v63, %v4265_v8  ;;  %v4268_v28 = vsel %vm2322_vm5, %v2258_v30, inf  ;;  %v2261_v29 = vmax.f32 %v3541_v42, 0.0 }
 0x1a0   : > { %v2578_v36 = vmin.f32 %v2574_v47, %v4268_v28  ;;  %v2260_v45 = vmax.f32 %v3542_v12, 0.0  ;;  %v3358_v53 = vpop.f32.mrb[22].mxu1  ;;  %v3511_v4 = vpop.f32.mrb[24].mxu0 }
 0x1a1   : > { %vm2325_vm6 = vcmp.lt.f32.partialorder %v2261_v29, inf  ;;  %v3543_v18 = vadd.f32 %v3508_v34, %v3358_v53  ;;  %v1333_v26 = vpop.f32.mrb[23].mxu1  ;;  %v2194_v37 = vpop.f32.mrb[25].mxu0 }
 0x1a2   : > { %v4271_v51 = vsel %vm2325_vm6, %v2261_v29, inf  ;;  %vm2324_vm7 = vcmp.lt.f32.partialorder %v2260_v45, inf  ;;  %v3544_v61 = vadd.f32 %v2182_v3, %v1333_v26 }
 0x1a3   : > { %v2581_v5 = vmin.f32 %v2577_v22, %v4271_v51  ;;  %v4274_v17 = vsel %vm2324_vm7, %v2260_v45, inf  ;;  %v2263_v48 = vmax.f32 %v3543_v18, 0.0 }
 0x1a4   : > { %v2580_v55 = vmin.f32 %v2576_v25, %v4274_v17  ;;  %v2262_v49 = vmax.f32 %v3544_v61, 0.0  ;;  %v3361_v41 = vpop.f32.mrb[24].mxu1  ;;  %v3514_v0 = vpop.f32.mrb[26].mxu0 }
 0x1a5   : > { %vm2327_vm8 = vcmp.lt.f32.partialorder %v2263_v48, inf  ;;  %v3545_v43 = vadd.f32 %v3511_v4, %v3361_v41  ;;  %v1347_v35 = vpop.f32.mrb[25].mxu1  ;;  %v2206_v56 = vpop.f32.mrb[27].mxu0 }
 0x1a6   : > { %v4277_v7 = vsel %vm2327_vm8, %v2263_v48, inf  ;;  %vm2326_vm9 = vcmp.lt.f32.partialorder %v2262_v49, inf  ;;  %v3546_v39 = vadd.f32 %v2194_v37, %v1347_v35 }
 0x1a7   : > { %v2583_v54 = vmin.f32 %v2579_v16, %v4277_v7  ;;  %v4280_v63 = vsel %vm2326_vm9, %v2262_v49, inf  ;;  %v2265_v59 = vmax.f32 %v3545_v43, 0.0 }
 0x1a8   : > { %v2582_v47 = vmin.f32 %v2578_v36, %v4280_v63  ;;  %v2264_v52 = vmax.f32 %v3546_v39, 0.0  ;;  %v3364_v14 = vpop.f32.mrb[26].mxu1  ;;  %v3517_v13 = vpop.f32.mrb[28].mxu0 }
 0x1a9   : > { %vm2329_vm10 = vcmp.lt.f32.partialorder %v2265_v59, inf  ;;  %v3547_v1 = vadd.f32 %v3514_v0, %v3364_v14  ;;  %v1361_v10 = vpop.f32.mrb[27].mxu1  ;;  %v2218_v15 = vpop.f32.mrb[29].mxu0 }
 0x1aa   : > { %v4283_v21 = vsel %vm2329_vm10, %v2265_v59, inf  ;;  %vm2328_vm11 = vcmp.lt.f32.partialorder %v2264_v52, inf  ;;  %v3548_v22 = vadd.f32 %v2206_v56, %v1361_v10 }
 0x1ab   : > { %v2585_v24 = vmin.f32 %v2581_v5, %v4283_v21  ;;  %v4286_v25 = vsel %vm2328_vm11, %v2264_v52, inf  ;;  %v2267_v30 = vmax.f32 %v3547_v1, 0.0  ;;  %v2601_v52 = vlaneseq }
 0x1ac   : > { %v2584_v32 = vmin.f32 %v2580_v55, %v4286_v25  ;;  %v2266_v34 = vmax.f32 %v3548_v22, 0.0  ;;  %v3367_v42 = vpop.f32.mrb[28].mxu1  ;;  %v3520_v2 = vpop.f32.mrb[30].mxu0 }
 0x1ad   : > { %vm2331_vm12 = vcmp.lt.f32.partialorder %v2267_v30, inf  ;;  %v3549_v3 = vadd.f32 %v3517_v13, %v3367_v42  ;;  %v1375_v12 = vpop.f32.mrb[29].mxu1  ;;  %v2230_v16 = vpop.f32.mrb[31].mxu0  ;;  %v4307_v1 = vshrl.u32 %v2601_v52, 7 }
 0x1ae   : > { %v4289_v29 = vsel %vm2331_vm12, %v2267_v30, inf  ;;  %vm2330_vm13 = vcmp.lt.f32.partialorder %v2266_v34, inf  ;;  %v3550_v36 = vadd.f32 %v2218_v15, %v1375_v12 }
 0x1af   : > { %v2587_v45 = vmin.f32 %v2583_v54, %v4289_v29  ;;  %v4292_v53 = vsel %vm2330_vm13, %v2266_v34, inf  ;;  %v2269_v4 = vmax.f32 %v3549_v3, 0.0  ;;  %v4310_v22 = vadd.s32 8, %v4307_v1 }
 0x1b0   : > { %v2586_v18 = vmin.f32 %v2582_v47, %v4292_v53  ;;  %v2268_v26 = vmax.f32 %v3550_v36, 0.0  ;;  %v3370_v37 = vpop.f32.mrb[30].mxu1  ;;  %v4316_v30 = vadd.s32 24, %v4307_v1  ;;  %v4319_v34 = vadd.s32 32, %v4307_v1 }
 0x1b1   : > { %vm2333_vm14 = vcmp.lt.f32.partialorder %v2269_v4, inf  ;;  %v3551_v61 = vadd.f32 %v3520_v2, %v3370_v37  ;;  %v1389_v5 = vpop.f32.mrb[31].mxu1  ;;  %v4322_v42 = vadd.s32 40, %v4307_v1  ;;  %v4325_v2 = vadd.s32 48, %v4307_v1 }
 0x1b2   : > { %v4295_v48 = vsel %vm2333_vm14, %v2269_v4, inf  ;;  %vm2332_vm15 = vcmp.lt.f32.partialorder %v2268_v26, inf  ;;  %v3552_v55 = vadd.f32 %v2230_v16, %v1389_v5  ;;  %v4328_v3 = vadd.s32 56, %v4307_v1 }
 0x1b3   : > { %v2589_v49 = vmin.f32 %v2585_v24, %v4295_v48  ;;  %v4298_v41 = vsel %vm2332_vm15, %v2268_v26, inf  ;;  %v2271_v0 = vmax.f32 %v3551_v61, 0.0  ;;  %v4313_v24 = vadd.s32 16, %v4307_v1 }
 0x1b4   : > { %v2588_v43 = vmin.f32 %v2584_v32, %v4298_v41  ;;  %v2270_v35 = vmax.f32 %v3552_v55, 0.0  ;;  %v4331_v12 = vadd.s32 64, %v4307_v1  ;;  %v4334_v16 = vadd.s32 72, %v4307_v1 }
 0x1b5   : > { %vm2335_vm0 = vcmp.lt.f32.partialorder %v2271_v0, inf  ;;  %v4337_v36 = vadd.s32 80, %v4307_v1  ;;  %v4340_v4 = vadd.s32 88, %v4307_v1  ;;  %v4346_v26 = vadd.s32 104, %v4307_v1 }
 0x1b6   : > { %v2592_v56 = vmin.f32 %v2588_v43, %v2589_v49  ;;  %v4301_v39 = vsel %vm2335_vm0, %v2271_v0, inf  ;;  %vm2334_vm1 = vcmp.lt.f32.partialorder %v2270_v35, inf  ;;  %v4349_v37 = vadd.s32 112, %v4307_v1 }
 0x1b7   : > { %4678 = vst [vmem:[#allocation4_spill] sm:$0xff] %v4301_v39  ;;  %v2591_v54 = vmin.f32 %v2587_v45, %v4301_v39  ;;  %v4304_v59 = vsel %vm2334_vm1, %v2270_v35, inf  ;;  %v4352_v61 = vadd.s32 120, %v4307_v1  ;;  %v4355_v5 = vadd.s32 128, %v4307_v1 }
 0x1b8   : > { %v2590_v47 = vmin.f32 %v2586_v18, %v4304_v59  ;;  %v4343_v18 = vadd.s32 96, %v4307_v1  ;;  %v4358_v55 = vadd.s32 136, %v4307_v1  ;;  %v4361_v0 = vadd.s32 144, %v4307_v1 }
 0x1b9   : > { %v4364_v43 = vadd.s32 152, %v4307_v1  ;;  %v4367_v35 = vadd.s32 160, %v4307_v1  ;;  %v4379_v52 = vadd.s32 192, %v4307_v1 }
 0x1ba   : > { %v2593_v14 = vmin.f32 %v2590_v47, %v2591_v54  ;;  %v4373_v54 = vadd.s32 176, %v4307_v1  ;;  %v4376_v47 = vadd.s32 184, %v4307_v1 }
 0x1bc   : > { %v2594_v13 = vmin.f32 %v2592_v56, %v2593_v14  ;;  %v4370_v56 = vadd.s32 168, %v4307_v1  ;;  %4679 = vst [vmem:[#allocation5_spill] sm:$0xff] %v4373_v54  ;;  %4680 = vst [vmem:[#allocation6_spill] sm:$0xff] %v4376_v47  ;;  %v4396_v54 = vadd.s32 232, %v4307_v1  ;;  %v4399_v47 = vadd.s32 240, %v4307_v1 }
 0x1be   : > { %v2595_v10 = vrot.slane %v2594_v13, 4  ;;  %4681 = vst [vmem:[#allocation7_spill] sm:$0xff] %v4399_v47 }
 0x1c0   : > { %v2596_v15 = vmin.f32 %v2594_v13, %v2595_v10  ;;  %v4384_v13 = vadd.s32 200, %v4307_v1  ;;  %v4387_v10 = vadd.s32 208, %v4307_v1 }
 0x1c2   : > { %v2597_v32 = vrot.slane %v2596_v15, 2 }
 0x1c4   : > { %v2598_v45 = vmin.f32 %v2596_v15, %v2597_v32  ;;  %v4390_v15 = vadd.s32 216, %v4307_v1  ;;  %v4393_v32 = vadd.s32 224, %v4307_v1 }
 0x1c6   : > { %v2599_v49 = vrot.slane %v2598_v45, 1 }
 0x1c8   : > { %v4381_v14 = vmin.f32 %v2598_v45, %v2599_v49  ;;  %v4402_v45 = vadd.s32 248, %v4307_v1 }
 0x1ca   : > { %4682 = vst [vmem:[#allocation8_spill] sm:$0xff] %v4402_v45  ;;  %vm2730_vm2 = vcmp.le.f32.partialorder %v4213_v38, %v4381_v14  ;;  %vm2731_vm3 = vcmp.le.f32.partialorder %v4211_v50, %v4381_v14  ;;  %vm2732_vm4 = vcmp.le.f32.partialorder %v4227_v11, %v4381_v14  ;;  %vm2733_vm5 = vcmp.le.f32.partialorder %v4223_v58, %v4381_v14 }
 0x1cb   : > { %vm2734_vm6 = vcmp.le.f32.partialorder %v4219_v27, %v4381_v14  ;;  %vm2735_vm7 = vcmp.le.f32.partialorder %v4215_v31, %v4381_v14  ;;  %vm2736_vm8 = vcmp.le.f32.partialorder %v4231_v19, %v4381_v14  ;;  %vm2737_vm9 = vcmp.le.f32.partialorder %v4225_v9, %v4381_v14 }
 0x1cc   : > { %vm2738_vm10 = vcmp.le.f32.partialorder %v4238_v62, %v4381_v14  ;;  %vm2755_vm13 = vcmp.le.f32.partialorder %v4283_v21, %v4381_v14  ;;  %vm2756_vm14 = vcmp.le.f32.partialorder %v4292_v53, %v4381_v14  ;;  %vm2757_vm15 = vcmp.le.f32.partialorder %v4289_v29, %v4381_v14 }
 0x1cd   : > { %vm2758_vm0 = vcmp.le.f32.partialorder %v4298_v41, %v4381_v14  ;;  %vm2759_vm1 = vcmp.le.f32.partialorder %v4295_v48, %v4381_v14  ;;  %vm2760_vm11 = vcmp.le.f32.partialorder %v4304_v59, %v4381_v14  ;;  %vm2761_vm12 = vcmp.le.f32.partialorder %v4301_v39, %v4381_v14 }
 0x1ce   : > { %v2762_v49 = vsel %vm2730_vm2, %v4307_v1, 1073741824  ;;  %v2763_v45 = vsel %vm2731_vm3, %v4310_v22, 1073741824  ;;  %v2764_v47 = vsel %vm2732_vm4, %v4313_v24, 1073741824  ;;  %v2765_v39 = vsel %vm2733_vm5, %v4316_v30, 1073741824  ;;  %v4696_v1 = vld [vmem:[#allocation5_spill] sm:$0xff]  ;;  %v4698_v22 = vld [vmem:[#allocation6_spill] sm:$0xff] }
 0x1cf   : > { %v2766_v38 = vsel %vm2734_vm6, %v4319_v34, 1073741824  ;;  %v2767_v50 = vsel %vm2735_vm7, %v4322_v42, 1073741824  ;;  %v2768_v11 = vsel %vm2736_vm8, %v4325_v2, 1073741824  ;;  %v2769_v58 = vsel %vm2737_vm9, %v4328_v3, 1073741824  ;;  %v4701_v24 = vld [vmem:[#allocation7_spill] sm:$0xff] }
 0x1d0   : > { %v2770_v27 = vsel %vm2738_vm10, %v4331_v12, 1073741824  ;;  %vm4683_vm2 = vcmp.le.f32.partialorder %v4235_v33, %v4381_v14  ;;  %vm4684_vm3 = vcmp.le.f32.partialorder %v4244_v60, %v4381_v14  ;;  %vm4685_vm4 = vcmp.le.f32.partialorder %v4241_v44, %v4381_v14 }
 0x1d1   : > { %v2771_v31 = vsel %vm4683_vm2, %v4334_v16, 1073741824  ;;  %v2772_v19 = vsel %vm4684_vm3, %v4337_v36, 1073741824  ;;  %v2773_v9 = vsel %vm4685_vm4, %v4340_v4, 1073741824  ;;  %vm4686_vm5 = vcmp.le.f32.partialorder %v4250_v40, %v4381_v14  ;;  %v4702_v30 = vld [vmem:[#allocation8_spill] sm:$0xff] }
 0x1d2   : > { %v2774_v62 = vsel %vm4686_vm5, %v4343_v18, 1073741824  ;;  %vm4687_vm6 = vcmp.le.f32.partialorder %v4247_v46, %v4381_v14  ;;  %vm4688_vm7 = vcmp.le.f32.partialorder %v4256_v57, %v4381_v14  ;;  %vm4689_vm8 = vcmp.le.f32.partialorder %v4253_v6, %v4381_v14 }
 0x1d3   : > { %v2775_v33 = vsel %vm4687_vm6, %v4346_v26, 1073741824  ;;  %v2776_v60 = vsel %vm4688_vm7, %v4349_v37, 1073741824  ;;  %v2777_v44 = vsel %vm4689_vm8, %v4352_v61, 1073741824  ;;  %vm4690_vm9 = vcmp.le.f32.partialorder %v4262_v23, %v4381_v14 }
 0x1d4   : > { %v2778_v40 = vsel %vm4690_vm9, %v4355_v5, 1073741824  ;;  %vm4691_vm10 = vcmp.le.f32.partialorder %v4259_v20, %v4381_v14  ;;  %vm4692_vm2 = vcmp.le.f32.partialorder %v4268_v28, %v4381_v14  ;;  %vm4693_vm3 = vcmp.le.f32.partialorder %v4265_v8, %v4381_v14 }
 0x1d5   : > { %v2779_v46 = vsel %vm4691_vm10, %v4358_v55, 1073741824  ;;  %v2780_v57 = vsel %vm4692_vm2, %v4361_v0, 1073741824  ;;  %v2781_v6 = vsel %vm4693_vm3, %v4364_v43, 1073741824  ;;  %vm4694_vm4 = vcmp.le.f32.partialorder %v4274_v17, %v4381_v14 }
 0x1d6   : > { %v2782_v23 = vsel %vm4694_vm4, %v4367_v35, 1073741824  ;;  %vm4695_vm5 = vcmp.le.f32.partialorder %v4271_v51, %v4381_v14  ;;  %vm4697_vm6 = vcmp.le.f32.partialorder %v4280_v63, %v4381_v14  ;;  %vm4699_vm7 = vcmp.le.f32.partialorder %v4277_v7, %v4381_v14 }
 0x1d7   : > { %v2783_v20 = vsel %vm4695_vm5, %v4370_v56, 1073741824  ;;  %v2784_v28 = vsel %vm4697_vm6, %v4696_v1, 1073741824  ;;  %v2785_v8 = vsel %vm4699_vm7, %v4698_v22, 1073741824  ;;  %vm4700_vm8 = vcmp.le.f32.partialorder %v4286_v25, %v4381_v14 }
 0x1d8   : > { %v2786_v17 = vsel %vm4700_vm8, %v4379_v52, 1073741824  ;;  %v2787_v51 = vsel %vm2755_vm13, %v4384_v13, 1073741824  ;;  %v2788_v63 = vsel %vm2756_vm14, %v4387_v10, 1073741824  ;;  %v2789_v7 = vsel %vm2757_vm15, %v4390_v15, 1073741824 }
 0x1d9   : > { %v2790_v25 = vsel %vm2758_vm0, %v4393_v32, 1073741824  ;;  %v2791_v21 = vsel %vm2759_vm1, %v4396_v54, 1073741824  ;;  %v2792_v53 = vsel %vm2760_vm11, %v4701_v24, 1073741824  ;;  %v2793_v29 = vsel %vm2761_vm12, %v4702_v30, 1073741824 }
 0x1da   : > { %vm2794_vm13 = vcmp.lt.s32.totalorder %v2762_v49, %v2766_v38  ;;  %vm2796_vm14 = vcmp.lt.s32.totalorder %v2763_v45, %v2767_v50  ;;  %vm2798_vm15 = vcmp.lt.s32.totalorder %v2764_v47, %v2768_v11  ;;  %vm2800_vm9 = vcmp.lt.s32.totalorder %v2765_v39, %v2769_v58 }
 0x1db   : > { %v2795_v41 = vsel %vm2794_vm13, %v2762_v49, %v2766_v38  ;;  %v2797_v42 = vsel %vm2796_vm14, %v2763_v45, %v2767_v50  ;;  %v2799_v2 = vsel %vm2798_vm15, %v2764_v47, %v2768_v11  ;;  %v2801_v3 = vsel %vm2800_vm9, %v2765_v39, %v2769_v58 }
 0x1dc   : > { %vm2802_vm0 = vcmp.lt.s32.totalorder %v2795_v41, %v2770_v27  ;;  %vm2804_vm1 = vcmp.lt.s32.totalorder %v2797_v42, %v2771_v31  ;;  %vm2806_vm10 = vcmp.lt.s32.totalorder %v2799_v2, %v2772_v19  ;;  %vm2808_vm2 = vcmp.lt.s32.totalorder %v2801_v3, %v2773_v9 }
 0x1dd   : > { %v2803_v48 = vsel %vm2802_vm0, %v2795_v41, %v2770_v27  ;;  %v2805_v59 = vsel %vm2804_vm1, %v2797_v42, %v2771_v31  ;;  %v2807_v12 = vsel %vm2806_vm10, %v2799_v2, %v2772_v19  ;;  %v2809_v16 = vsel %vm2808_vm2, %v2801_v3, %v2773_v9 }
 0x1de   : > { %vm2810_vm11 = vcmp.lt.s32.totalorder %v2803_v48, %v2774_v62  ;;  %vm2812_vm3 = vcmp.lt.s32.totalorder %v2805_v59, %v2775_v33  ;;  %vm2814_vm4 = vcmp.lt.s32.totalorder %v2807_v12, %v2776_v60  ;;  %vm2816_vm12 = vcmp.lt.s32.totalorder %v2809_v16, %v2777_v44 }
 0x1df   : > { %v2811_v36 = vsel %vm2810_vm11, %v2803_v48, %v2774_v62  ;;  %v2813_v4 = vsel %vm2812_vm3, %v2805_v59, %v2775_v33  ;;  %v2815_v18 = vsel %vm2814_vm4, %v2807_v12, %v2776_v60  ;;  %v2817_v26 = vsel %vm2816_vm12, %v2809_v16, %v2777_v44 }
 0x1e0   : > { %vm2818_vm5 = vcmp.lt.s32.totalorder %v2811_v36, %v2778_v40  ;;  %vm2820_vm6 = vcmp.lt.s32.totalorder %v2813_v4, %v2779_v46  ;;  %vm2822_vm7 = vcmp.lt.s32.totalorder %v2815_v18, %v2780_v57  ;;  %vm2824_vm8 = vcmp.lt.s32.totalorder %v2817_v26, %v2781_v6 }
 0x1e1   : > { %v2819_v39 = vsel %vm2818_vm5, %v2811_v36, %v2778_v40  ;;  %v2821_v37 = vsel %vm2820_vm6, %v2813_v4, %v2779_v46  ;;  %v2823_v61 = vsel %vm2822_vm7, %v2815_v18, %v2780_v57  ;;  %v2825_v5 = vsel %vm2824_vm8, %v2817_v26, %v2781_v6 }
 0x1e2   : > { %vm2826_vm13 = vcmp.lt.s32.totalorder %v2819_v39, %v2782_v23  ;;  %vm2828_vm14 = vcmp.lt.s32.totalorder %v2821_v37, %v2783_v20  ;;  %vm2830_vm15 = vcmp.lt.s32.totalorder %v2823_v61, %v2784_v28  ;;  %vm2832_vm9 = vcmp.lt.s32.totalorder %v2825_v5, %v2785_v8 }
 0x1e3   : > { %v2827_v55 = vsel %vm2826_vm13, %v2819_v39, %v2782_v23  ;;  %v2829_v0 = vsel %vm2828_vm14, %v2821_v37, %v2783_v20  ;;  %v2831_v43 = vsel %vm2830_vm15, %v2823_v61, %v2784_v28  ;;  %v2833_v35 = vsel %vm2832_vm9, %v2825_v5, %v2785_v8 }
 0x1e4   : > { %vm2834_vm0 = vcmp.lt.s32.totalorder %v2827_v55, %v2786_v17  ;;  %vm2836_vm1 = vcmp.lt.s32.totalorder %v2829_v0, %v2787_v51  ;;  %vm2838_vm10 = vcmp.lt.s32.totalorder %v2831_v43, %v2788_v63  ;;  %vm2840_vm2 = vcmp.lt.s32.totalorder %v2833_v35, %v2789_v7 }
 0x1e5   : > { %v2835_v56 = vsel %vm2834_vm0, %v2827_v55, %v2786_v17  ;;  %v2837_v54 = vsel %vm2836_vm1, %v2829_v0, %v2787_v51  ;;  %v2839_v47 = vsel %vm2838_vm10, %v2831_v43, %v2788_v63  ;;  %v2841_v52 = vsel %vm2840_vm2, %v2833_v35, %v2789_v7 }
 0x1e6   : > { %vm2842_vm11 = vcmp.lt.s32.totalorder %v2835_v56, %v2790_v25  ;;  %vm2844_vm3 = vcmp.lt.s32.totalorder %v2837_v54, %v2791_v21  ;;  %vm2846_vm4 = vcmp.lt.s32.totalorder %v2839_v47, %v2792_v53  ;;  %vm2848_vm12 = vcmp.lt.s32.totalorder %v2841_v52, %v2793_v29 }
 0x1e7   : > { %v2843_v13 = vsel %vm2842_vm11, %v2835_v56, %v2790_v25  ;;  %v2845_v10 = vsel %vm2844_vm3, %v2837_v54, %v2791_v21  ;;  %v2847_v15 = vsel %vm2846_vm4, %v2839_v47, %v2792_v53  ;;  %v2849_v32 = vsel %vm2848_vm12, %v2841_v52, %v2793_v29 }
 0x1e8   : > { %vm2850_vm5 = vcmp.lt.s32.totalorder %v2843_v13, %v2845_v10  ;;  %vm2852_vm6 = vcmp.lt.s32.totalorder %v2847_v15, %v2849_v32  ;;  %3705 = vrsqrt.f32 %v4381_v14  ;;  %vm2867_vm14 = vcmp.eq.f32.partialorder %v4381_v14, inf }
 0x1e9   : > { %v2851_v45 = vsel %vm2850_vm5, %v2843_v13, %v2845_v10  ;;  %v2853_v49 = vsel %vm2852_vm6, %v2847_v15, %v2849_v32  ;;  %v2870_v62 = vand.u32 2147483648, %v4381_v14  ;;  %vm2869_vm15 = vcmp.eq.f32.partialorder %v4381_v14, 0.0 }
 0x1ea   : > { %vm2854_vm7 = vcmp.lt.s32.totalorder %v2851_v45, %v2853_v49 }
 0x1eb   : > { %v2855_v38 = vsel %vm2854_vm7, %v2851_v45, %v2853_v49 }
 0x1ec   : > { %v2856_v50 = vrot.slane %v2855_v38, 4 }
 0x1ee   : > { %vm2857_vm8 = vcmp.lt.s32.totalorder %v2855_v38, %v2856_v50 }
 0x1ef   : > { %v2858_v11 = vsel %vm2857_vm8, %v2855_v38, %v2856_v50 }
 0x1f0   : > { %v2859_v58 = vrot.slane %v2858_v11, 2 }
 0x1f2   : > { %v3706_v27 = vpop.eup %3705  ;;  %vm2860_vm13 = vcmp.lt.s32.totalorder %v2858_v11, %v2859_v58 }
 0x1f3   : > { %v2861_v31 = vsel %vm2860_vm13, %v2858_v11, %v2859_v58  ;;  %v2866_v19 = vmul.f32 %v3706_v27, %v4381_v14 }
 0x1f4   : > { %v2862_v9 = vrot.slane %v2861_v31, 1 }
 0x1f5   : > { %v2868_v33 = vsel %vm2867_vm14, %v4381_v14, %v2866_v19 }
 0x1f6   : > { %vm2863_vm9 = vcmp.lt.s32.totalorder %v2861_v31, %v2862_v9  ;;  %v2871_v60 = vsel %vm2869_vm15, %v2870_v62, %v2868_v33 }
 0x1f7   : > { %v2864_v44 = vsel %vm2863_vm9, %v2861_v31, %v2862_v9  ;;  %2872 = vst [vmem:[%s251_s26] sm:$0xff] %v2871_v60 }
 0x1f8   : > { %2873 = vst [vmem:[%s258_s29] sm:$0xff] %v2864_v44 }
 0x1f9 PF: > { %s14_s14 = sadd.s32 1, %s3729_s14   ;;  %s4704_s12 = smov %s3725_s13 }
 0x1fa   : > { %p11_p5 = scmp.ge.s32.totalorder %s14_s14, 4   ;;  %s4705_s13 = smov %s4707_s15 }
 0x1fc   :  { %13 = sbr.rel (!%p11_p5) target bundleno = 2 (0x2), region = 81 }

// kernel: chamfer_3d_dist.2
= control target key start
LH: loop header
LB: loop body
LE: loop exit
PB: predicated region body
PF: predicated region fallthrough
CT: control target
= control target key end

     0   :  { %s2669_s12 = smov 0   ;;  %s2671_s13 = smov 0   ;;  %s3389_s0 = inlined_call_operand.vmem [shape: f32[2,128,5], index: 0, kind: input, shape index: {}]   ;;  %s3390_s1 = inlined_call_operand.vmem [shape: f32[2,5,256], index: 1, kind: input, shape index: {}]   ;;  %s3391_s2 = inlined_call_operand.vmem [shape: f32[2,8,256], index: 2, kind: output, shape index: {0}]   ;;  %s3392_s3 = inlined_call_operand.vmem [shape: s32[2,8,256], index: 3, kind: output, shape index: {1}]  }
   0x1   :  { %s2673_s14 = smov 0  }
   0x2 LB: > { %s33_s15 = sadd.s32 1, %s2642_s13  ;;  %p2420_p0 = scmp.ge.s32.totalorder %s2646_s14, 1  ;;  %s2646_s14 = sphi %s2673_s14, %s14_s14   ;;  %s2642_s13 = sphi %s2671_s13, %s3401_s13   ;;  %s2638_s12 = sphi %s2669_s12, %s3400_s12  }
   0x3   : > { %p35_p1 = scmp.ge.s32.totalorder %s33_s15, 2  ;;  %p187_p2 = scmp.lt.s32.totalorder %s2646_s14, 3 }
   0x5   : > { %s3403_s15 = smov (%p35_p1, %s33_s15), 0  ;;  %p188_p3 = pnand %p2420_p0, %p187_p2 }
   0x6   : > { %p238_p4 = scmp.lt.s32.totalorder (!%p188_p3), %s2638_s12, 1  ;;  %v2648_v0 = vmov (!%p188_p3), 0.0   ;;  %vm412_vm0 = vcmask (!%p188_p3), 1044480   ;;  %vm363_vm1 = vcmask (!%p188_p3), 39936  }
   0x7   : > { %191 = sbr.rel (%p188_p3) target bundleno = 503 (0x1f7), region = 28  ;;  %1112 = vmatprep.mubr.f32.mxu0 (!%p188_p3), %v2648_v0  ;;  %485 = vmatprep.mubr.f32.mxu1 (!%p188_p3), %v2648_v0 }
   0xe   : > { %s3405_s12 = smov (!%p238_p4, %s2638_s12), 1 }
   0xf   : > { %s2431_s16 = sshll.u32 %s3405_s12, 7  ;;  %s2689_s17 = sshll.u32 %s3405_s12, 4 }
  0x10   : > { %s2694_s20 = scalar_lea.vmem %s3389_s0, %s2431_s16  ;;  %s255_s23 = scalar_lea.vmem %s3390_s1, %s2689_s17 }
  0x11   : > { %v362_v1 = vld [vmem:[%s255_s23 + $0x8] sm:$0x1f]  ;;  %v361_v2 = vld [vmem:[%s255_s23] sm:$0x1f]  ;;  %v347_v8 = vld [vmem:[%s2694_s20 + $0x10] sm:$0xff]  ;;  %s3296_s26 = scalar_lea.vmem %s3391_s2, %s2689_s17  ;;  %s3354_s29 = scalar_lea.vmem %s3392_s3, %s2689_s17 }
  0x12   : > { %v345_v3 = vld [vmem:[%s2694_s20] sm:$0xff]  ;;  %v417_v4 = vsel %vm412_vm0, %v362_v1, 0  ;;  %v414_v5 = vsel %vm412_vm0, %v361_v2, 0  ;;  %v346_v7 = vld [vmem:[%s2694_s20 + $0x8] sm:$0xff]  ;;  %v348_v9 = vld [vmem:[%s2694_s20 + $0x18] sm:$0xff]  ;;  %v371_v16 = vsel %vm363_vm1, %v347_v8, 0 }
  0x13   : > { %v365_v6 = vsel %vm363_vm1, %v345_v3, 0  ;;  %v419_v10 = vand.u32 4294901760, %v417_v4  ;;  %v2705_v11 = vand.u32 4294901760, %v414_v5  ;;  %v368_v13 = vsel %vm363_vm1, %v346_v7, 0  ;;  %v349_v14 = vld [vmem:[%s2694_s20 + $0x20] sm:$0xff]  ;;  %v350_v23 = vld [vmem:[%s2694_s20 + $0x28] sm:$0xff] }
  0x14   : > { %v2707_v12 = vand.u32 4294901760, %v365_v6  ;;  %v2711_v15 = vand.u32 4294901760, %v368_v13  ;;  %v374_v17 = vsel %vm363_vm1, %v348_v9, 0  ;;  %v377_v18 = vsel %vm363_vm1, %v349_v14, 0  ;;  %v351_v42 = vld [vmem:[%s2694_s20 + $0x30] sm:$0xff]  ;;  %v352_v49 = vld [vmem:[%s2694_s20 + $0x38] sm:$0xff] }
  0x15   : > { %1047 = vmatprep.subr.mxu0 %v419_v10  ;;  %v2717_v19 = vsub.f32 %v414_v5, %v2705_v11  ;;  %420 = vmatprep.subr.mxu1 %v419_v10  ;;  %v663_v21 = vsub.f32 %v417_v4, %v419_v10  ;;  %v2722_v22 = vand.u32 4294901760, %v371_v16  ;;  %v2730_v25 = vand.u32 4294901760, %v374_v17  ;;  %v353_v56 = vld [vmem:[%s2694_s20 + $0x40] sm:$0xff]  ;;  %v354_v63 = vld [vmem:[%s2694_s20 + $0x48] sm:$0xff] }
  0x16   : > { %v2720_v20 = vsub.f32 %v365_v6, %v2707_v12  ;;  %1049 = vmatpush1.msra.mxu0 %v2705_v11  ;;  %422 = vmatpush1.msra.mxu1 %v2705_v11  ;;  %v2728_v24 = vsub.f32 %v368_v13, %v2711_v15  ;;  %v2741_v32 = vand.u32 4294901760, %v377_v18  ;;  %v380_v33 = vsel %vm363_vm1, %v350_v23, 0  ;;  %v355_v6 = vld [vmem:[%s2694_s20 + $0x50] sm:$0xff] }
  0x17   : > { %v664_v27 = vand.u32 4294901760, %v663_v21  ;;  %v670_v28 = vand.u32 4294901760, %v2717_v19  ;;  %v2735_v29 = vsub.f32 %v371_v16, %v2722_v22  ;;  %v2739_v31 = vsub.f32 %v374_v17, %v2730_v25  ;;  %v356_v17 = vld [vmem:[%s2694_s20 + $0x58] sm:$0xff] }
  0x18   : > { %v488_v26 = vand.u32 4294901760, %v2720_v20  ;;  %v499_v30 = vand.u32 4294901760, %v2728_v24  ;;  %v2750_v43 = vand.u32 4294901760, %v380_v33  ;;  %v2755_v47 = vsub.f32 %v377_v18, %v2741_v32 }
  0x19   : > { %v665_v35 = vsub.f32 %v663_v21, %v664_v27  ;;  %1260 = vmatprep.subr.mxu0 %v664_v27  ;;  %v671_v36 = vsub.f32 %v2717_v19, %v670_v28  ;;  %v510_v37 = vand.u32 4294901760, %v2735_v29  ;;  %v521_v46 = vand.u32 4294901760, %v2739_v31 }
  0x1a   : > { %1116 = vmatmul.mubr.f32.vlgmr.msra.gmra.mrb[0].mxu0 %v488_v26  ;;  %v489_v34 = vsub.f32 %v2720_v20, %v488_v26  ;;  %v500_v38 = vsub.f32 %v2728_v24, %v499_v30  ;;  %v383_v48 = vsel %vm363_vm1, %v351_v42, 0  ;;  %v2762_v50 = vsub.f32 %v380_v33, %v2750_v43 }
  0x1b   : > { %1121 = vmatprep.mubr.f32.mxu0 %v2648_v0  ;;  %1264 = vmatpush1.msra.mxu0 %v670_v28  ;;  %v666_v40 = vand.u32 4294901760, %v665_v35  ;;  %v672_v41 = vand.u32 4294901760, %v671_v36  ;;  %v511_v45 = vsub.f32 %v2735_v29, %v510_v37  ;;  %v522_v52 = vsub.f32 %v2739_v31, %v521_v46  ;;  %v357_v28 = vld [vmem:[%s2694_s20 + $0x60] sm:$0xff] }
  0x1c   : > { %v490_v39 = vand.u32 4294901760, %v489_v34  ;;  %1441 = vmatprep.subr.mxu0 %v419_v10  ;;  %v501_v44 = vand.u32 4294901760, %v500_v38  ;;  %v532_v53 = vand.u32 4294901760, %v2755_v47  ;;  %v2766_v54 = vand.u32 4294901760, %v383_v48 }
  0x1d   : > { %667 = vmatprep.subr.mxu1 %v666_v40  ;;  %v512_v51 = vand.u32 4294901760, %v511_v45  ;;  %v386_v55 = vsel %vm363_vm1, %v352_v49, 0  ;;  %v543_v57 = vand.u32 4294901760, %v2762_v50  ;;  %v523_v58 = vand.u32 4294901760, %v522_v52 }
  0x1e   : > { %491 = vmatmul.mubr.f32.vlgmr.msra.gmra.mrb[0].mxu1 %v490_v39  ;;  %1125 = vmatmul.mubr.f32.gmra.mrb[2].mxu0 %v499_v30  ;;  %v533_v59 = vsub.f32 %v2755_v47, %v532_v53  ;;  %v2775_v60 = vsub.f32 %v383_v48, %v2766_v54  ;;  %v2777_v61 = vand.u32 4294901760, %v386_v55  ;;  %v389_v62 = vsel %vm363_vm1, %v353_v56, 0  ;;  %v358_v39 = vld [vmem:[%s2694_s20 + $0x68] sm:$0xff]  ;;  %v359_v48 = vld [vmem:[%s2694_s20 + $0x70] sm:$0xff] }
  0x1f   : > { %673 = vmatpush1.msra.mxu1 %v672_v41  ;;  %496 = vmatprep.mubr.f32.mxu1 %v2648_v0  ;;  %v544_v1 = vsub.f32 %v2762_v50, %v543_v57  ;;  %v2788_v5 = vand.u32 4294901760, %v389_v62  ;;  %v392_v7 = vsel %vm363_vm1, %v354_v63, 0  ;;  %v395_v9 = vsel %vm363_vm1, %v355_v6, 0 }
  0x20   : > { %1130 = vmatprep.mubr.f32.mxu0 %v2648_v0  ;;  %851 = vmatprep.subr.mxu1 %v663_v21  ;;  %v534_v2 = vand.u32 4294901760, %v533_v59  ;;  %v554_v3 = vand.u32 4294901760, %v2775_v60  ;;  %v2786_v4 = vsub.f32 %v386_v55, %v2777_v61  ;;  %v2800_v16 = vand.u32 4294901760, %v392_v7 }
  0x21   : > { %v545_v8 = vand.u32 4294901760, %v544_v1  ;;  %v2798_v14 = vsub.f32 %v389_v62, %v2788_v5  ;;  %v2805_v18 = vand.u32 4294901760, %v395_v9  ;;  %v398_v30 = vsel %vm363_vm1, %v356_v17, 0 }
  0x22   : > { %502 = vmatmul.mubr.f32.gmra.mrb[2].mxu1 %v501_v44  ;;  %1134 = vmatmul.mubr.f32.gmra.mrb[4].mxu0 %v510_v37  ;;  %v555_v10 = vsub.f32 %v2775_v60, %v554_v3  ;;  %v565_v13 = vand.u32 4294901760, %v2786_v4  ;;  %v2810_v27 = vsub.f32 %v392_v7, %v2800_v16  ;;  %v401_v34 = vsel %vm363_vm1, %v357_v28, 0 }
  0x23   : > { %507 = vmatprep.mubr.f32.mxu1 %v2648_v0  ;;  %1139 = vmatprep.mubr.f32.mxu0 %v2648_v0  ;;  %v576_v26 = vand.u32 4294901760, %v2798_v14  ;;  %v2817_v33 = vsub.f32 %v395_v9, %v2805_v18  ;;  %v2822_v38 = vand.u32 4294901760, %v398_v30  ;;  %v2827_v40 = vand.u32 4294901760, %v401_v34 }
  0x24   : > { %v556_v21 = vand.u32 4294901760, %v555_v10  ;;  %v566_v23 = vsub.f32 %v2786_v4, %v565_v13  ;;  %v587_v37 = vand.u32 4294901760, %v2810_v27  ;;  %v407_v56 = vsel %vm363_vm1, %v359_v48, 0 }
  0x25   : > { %v577_v36 = vsub.f32 %v2798_v14, %v576_v26  ;;  %v598_v44 = vand.u32 4294901760, %v2817_v33  ;;  %v2832_v45 = vsub.f32 %v398_v30, %v2822_v38  ;;  %v2839_v49 = vsub.f32 %v401_v34, %v2827_v40 }
  0x26   : > { %513 = vmatmul.mubr.f32.gmra.mrb[4].mxu1 %v512_v51  ;;  %1143 = vmatmul.mubr.f32.gmra.mrb[6].mxu0 %v521_v46  ;;  %v567_v35 = vand.u32 4294901760, %v566_v23  ;;  %v588_v42 = vsub.f32 %v2810_v27, %v587_v37  ;;  %v404_v46 = vsel %vm363_vm1, %v358_v39, 0  ;;  %v2854_v1 = vand.u32 4294901760, %v407_v56 }
  0x27   : > { %518 = vmatprep.mubr.f32.mxu1 %v2648_v0  ;;  %1148 = vmatprep.mubr.f32.mxu0 %v2648_v0  ;;  %v578_v41 = vand.u32 4294901760, %v577_v36  ;;  %v599_v52 = vsub.f32 %v2817_v33, %v598_v44  ;;  %v2843_v55 = vand.u32 4294901760, %v404_v46 }
  0x28   : > { %v589_v51 = vand.u32 4294901760, %v588_v42 }
  0x29   : > { %v600_v59 = vand.u32 4294901760, %v599_v52  ;;  %v2852_v63 = vsub.f32 %v404_v46, %v2843_v55 }
  0x2a   : > { %524 = vmatmul.mubr.f32.gmra.mrb[6].mxu1 %v523_v58  ;;  %1152 = vmatmul.mubr.f32.gmra.mrb[8].mxu0 %v532_v53  ;;  %v609_v53 = vand.u32 4294901760, %v2832_v45  ;;  %v620_v58 = vand.u32 4294901760, %v2839_v49 }
  0x2b   : > { %529 = vmatprep.mubr.f32.mxu1 %v2648_v0  ;;  %1157 = vmatprep.mubr.f32.mxu0 %v2648_v0  ;;  %v631_v7 = vand.u32 4294901760, %v2852_v63 }
  0x2c   : > { %v610_v62 = vsub.f32 %v2832_v45, %v609_v53 }
  0x2e   : > { %535 = vmatmul.mubr.f32.gmra.mrb[8].mxu1 %v534_v2  ;;  %1161 = vmatmul.mubr.f32.gmra.mrb[10].mxu0 %v543_v57  ;;  %v360_v57 = vld [vmem:[%s2694_s20 + $0x78] sm:$0xff]  ;;  %v611_v6 = vand.u32 4294901760, %v610_v62 }
  0x2f   : > { %540 = vmatprep.mubr.f32.mxu1 %v2648_v0  ;;  %1166 = vmatprep.mubr.f32.mxu0 %v2648_v0  ;;  %v410_v2 = vsel %vm363_vm1, %v360_v57, 0 }
  0x30   : > { %v2864_v9 = vand.u32 4294901760, %v410_v2 }
  0x32   : > { %546 = vmatmul.mubr.f32.gmra.mrb[10].mxu1 %v545_v8  ;;  %1170 = vmatmul.mubr.f32.gmra.mrb[12].mxu0 %v554_v3  ;;  %v621_v3 = vsub.f32 %v2839_v49, %v620_v58  ;;  %v2862_v8 = vsub.f32 %v407_v56, %v2854_v1 }
  0x33   : > { %551 = vmatprep.mubr.f32.mxu1 %v2648_v0  ;;  %1175 = vmatprep.mubr.f32.mxu0 %v2648_v0 }
  0x34   : > { %v622_v10 = vand.u32 4294901760, %v621_v3  ;;  %v642_v17 = vand.u32 4294901760, %v2862_v8 }
  0x36   : > { %557 = vmatmul.mubr.f32.gmra.mrb[12].mxu1 %v556_v21  ;;  %1179 = vmatmul.mubr.f32.gmra.mrb[14].mxu0 %v565_v13  ;;  %v632_v13 = vsub.f32 %v2852_v63, %v631_v7  ;;  %v2871_v21 = vsub.f32 %v410_v2, %v2864_v9 }
  0x37   : > { %562 = vmatprep.mubr.f32.mxu1 %v2648_v0  ;;  %1184 = vmatprep.mubr.f32.mxu0 %v2648_v0 }
  0x38   : > { %v633_v23 = vand.u32 4294901760, %v632_v13  ;;  %v653_v28 = vand.u32 4294901760, %v2871_v21 }
  0x3a   : > { %568 = vmatmul.mubr.f32.gmra.mrb[14].mxu1 %v567_v35  ;;  %1188 = vmatmul.mubr.f32.gmra.mrb[16].mxu0 %v576_v26  ;;  %v643_v26 = vsub.f32 %v2862_v8, %v642_v17  ;;  %v654_v34 = vsub.f32 %v2871_v21, %v653_v28 }
  0x3b   : > { %573 = vmatprep.mubr.f32.mxu1 %v2648_v0  ;;  %1193 = vmatprep.mubr.f32.mxu0 %v2648_v0 }
  0x3c   : > { %v644_v30 = vand.u32 4294901760, %v643_v26  ;;  %v655_v35 = vand.u32 4294901760, %v654_v34 }
  0x3e   : > { %579 = vmatmul.mubr.f32.gmra.mrb[16].mxu1 %v578_v41  ;;  %1197 = vmatmul.mubr.f32.gmra.mrb[18].mxu0 %v587_v37 }
  0x3f   : > { %584 = vmatprep.mubr.f32.mxu1 %v2648_v0  ;;  %1202 = vmatprep.mubr.f32.mxu0 %v2648_v0 }
  0x42   : > { %590 = vmatmul.mubr.f32.gmra.mrb[18].mxu1 %v589_v51  ;;  %1206 = vmatmul.mubr.f32.gmra.mrb[20].mxu0 %v598_v44 }
  0x43   : > { %595 = vmatprep.mubr.f32.mxu1 %v2648_v0  ;;  %1211 = vmatprep.mubr.f32.mxu0 %v2648_v0 }
  0x46   : > { %601 = vmatmul.mubr.f32.gmra.mrb[20].mxu1 %v600_v59  ;;  %1215 = vmatmul.mubr.f32.gmra.mrb[22].mxu0 %v609_v53 }
  0x47   : > { %606 = vmatprep.mubr.f32.mxu1 %v2648_v0  ;;  %1220 = vmatprep.mubr.f32.mxu0 %v2648_v0 }
  0x4a   : > { %612 = vmatmul.mubr.f32.gmra.mrb[22].mxu1 %v611_v6  ;;  %1224 = vmatmul.mubr.f32.gmra.mrb[24].mxu0 %v620_v58 }
  0x4b   : > { %617 = vmatprep.mubr.f32.mxu1 %v2648_v0  ;;  %1229 = vmatprep.mubr.f32.mxu0 %v2648_v0 }
  0x4e   : > { %623 = vmatmul.mubr.f32.gmra.mrb[24].mxu1 %v622_v10  ;;  %1233 = vmatmul.mubr.f32.gmra.mrb[26].mxu0 %v631_v7 }
  0x4f   : > { %628 = vmatprep.mubr.f32.mxu1 %v2648_v0  ;;  %1238 = vmatprep.mubr.f32.mxu0 %v2648_v0 }
  0x52   : > { %634 = vmatmul.mubr.f32.gmra.mrb[26].mxu1 %v633_v23  ;;  %1242 = vmatmul.mubr.f32.gmra.mrb[28].mxu0 %v642_v17 }
  0x53   : > { %639 = vmatprep.mubr.f32.mxu1 %v2648_v0  ;;  %1247 = vmatprep.mubr.f32.mxu0 %v2648_v0 }
  0x56   : > { %645 = vmatmul.mubr.f32.gmra.mrb[28].mxu1 %v644_v30  ;;  %1251 = vmatmul.mubr.f32.gmra.mrb[30].mxu0 %v653_v28 }
  0x57   : > { %650 = vmatprep.mubr.f32.mxu1 %v2648_v0  ;;  %1327 = vmatprep.mubr.f32.mxu0 %v2648_v0 }
  0x5a   : > { %656 = vmatmul.mubr.f32.gmra.mrb[30].mxu1 %v655_v35  ;;  %1329 = vmatmul.mubr.f32.vlgmr.msra.gmra.mrb[0].mxu0 %v2707_v12 }
  0x5b   : > { %736 = vmatprep.mubr.f32.mxu1 %v2648_v0  ;;  %1334 = vmatprep.mubr.f32.mxu0 %v2648_v0 }
  0x5c   : > { %1443 = vmatpush1.msra.mxu0 %v2705_v11 }
  0x5e   : > { %738 = vmatmul.mubr.f32.vlgmr.msra.gmra.mrb[0].mxu1 %v2707_v12  ;;  %1336 = vmatmul.mubr.f32.gmra.mrb[2].mxu0 %v2711_v15 }
  0x5f   : > { %854 = vmatpush1.msra.mxu1 %v2717_v19  ;;  %743 = vmatprep.mubr.f32.mxu1 %v2648_v0 }
  0x60   : > { %1341 = vmatprep.mubr.f32.mxu0 %v2648_v0 }
  0x62   : > { %745 = vmatmul.mubr.f32.gmra.mrb[2].mxu1 %v2711_v15  ;;  %1343 = vmatmul.mubr.f32.gmra.mrb[4].mxu0 %v2722_v22 }
  0x63   : > { %750 = vmatprep.mubr.f32.mxu1 %v2648_v0  ;;  %1348 = vmatprep.mubr.f32.mxu0 %v2648_v0 }
  0x66   : > { %752 = vmatmul.mubr.f32.gmra.mrb[4].mxu1 %v2722_v22  ;;  %1350 = vmatmul.mubr.f32.gmra.mrb[6].mxu0 %v2730_v25 }
  0x67   : > { %757 = vmatprep.mubr.f32.mxu1 %v2648_v0  ;;  %1355 = vmatprep.mubr.f32.mxu0 %v2648_v0 }
  0x6a   : > { %759 = vmatmul.mubr.f32.gmra.mrb[6].mxu1 %v2730_v25  ;;  %1357 = vmatmul.mubr.f32.gmra.mrb[8].mxu0 %v2741_v32 }
  0x6b   : > { %764 = vmatprep.mubr.f32.mxu1 %v2648_v0  ;;  %1362 = vmatprep.mubr.f32.mxu0 %v2648_v0 }
  0x6e   : > { %766 = vmatmul.mubr.f32.gmra.mrb[8].mxu1 %v2741_v32  ;;  %1364 = vmatmul.mubr.f32.gmra.mrb[10].mxu0 %v2750_v43 }
  0x6f   : > { %771 = vmatprep.mubr.f32.mxu1 %v2648_v0  ;;  %1369 = vmatprep.mubr.f32.mxu0 %v2648_v0 }
  0x72   : > { %773 = vmatmul.mubr.f32.gmra.mrb[10].mxu1 %v2750_v43  ;;  %1371 = vmatmul.mubr.f32.gmra.mrb[12].mxu0 %v2766_v54 }
  0x73   : > { %778 = vmatprep.mubr.f32.mxu1 %v2648_v0  ;;  %1376 = vmatprep.mubr.f32.mxu0 %v2648_v0 }
  0x76   : > { %780 = vmatmul.mubr.f32.gmra.mrb[12].mxu1 %v2766_v54  ;;  %1378 = vmatmul.mubr.f32.gmra.mrb[14].mxu0 %v2777_v61 }
  0x77   : > { %785 = vmatprep.mubr.f32.mxu1 %v2648_v0  ;;  %1383 = vmatprep.mubr.f32.mxu0 %v2648_v0 }
  0x7a   : > { %787 = vmatmul.mubr.f32.gmra.mrb[14].mxu1 %v2777_v61  ;;  %1385 = vmatmul.mubr.f32.gmra.mrb[16].mxu0 %v2788_v5 }
  0x7b   : > { %792 = vmatprep.mubr.f32.mxu1 %v2648_v0  ;;  %1390 = vmatprep.mubr.f32.mxu0 %v2648_v0 }
  0x7e   : > { %794 = vmatmul.mubr.f32.gmra.mrb[16].mxu1 %v2788_v5  ;;  %1392 = vmatmul.mubr.f32.gmra.mrb[18].mxu0 %v2800_v16 }
  0x7f   : > { %799 = vmatprep.mubr.f32.mxu1 %v2648_v0  ;;  %1397 = vmatprep.mubr.f32.mxu0 %v2648_v0 }
  0x82   : > { %801 = vmatmul.mubr.f32.gmra.mrb[18].mxu1 %v2800_v16  ;;  %1399 = vmatmul.mubr.f32.gmra.mrb[20].mxu0 %v2805_v18 }
  0x83   : > { %806 = vmatprep.mubr.f32.mxu1 %v2648_v0  ;;  %1404 = vmatprep.mubr.f32.mxu0 %v2648_v0 }
  0x86   : > { %808 = vmatmul.mubr.f32.gmra.mrb[20].mxu1 %v2805_v18  ;;  %1406 = vmatmul.mubr.f32.gmra.mrb[22].mxu0 %v2822_v38 }
  0x87   : > { %813 = vmatprep.mubr.f32.mxu1 %v2648_v0  ;;  %1411 = vmatprep.mubr.f32.mxu0 %v2648_v0 }
  0x8a   : > { %815 = vmatmul.mubr.f32.gmra.mrb[22].mxu1 %v2822_v38  ;;  %1413 = vmatmul.mubr.f32.gmra.mrb[24].mxu0 %v2827_v40 }
  0x8b   : > { %820 = vmatprep.mubr.f32.mxu1 %v2648_v0  ;;  %1418 = vmatprep.mubr.f32.mxu0 %v2648_v0 }
  0x8e   : > { %822 = vmatmul.mubr.f32.gmra.mrb[24].mxu1 %v2827_v40  ;;  %1420 = vmatmul.mubr.f32.gmra.mrb[26].mxu0 %v2843_v55 }
  0x8f   : > { %827 = vmatprep.mubr.f32.mxu1 %v2648_v0  ;;  %1425 = vmatprep.mubr.f32.mxu0 %v2648_v0 }
  0x92   : > { %829 = vmatmul.mubr.f32.gmra.mrb[26].mxu1 %v2843_v55  ;;  %1427 = vmatmul.mubr.f32.gmra.mrb[28].mxu0 %v2854_v1 }
  0x93   : > { %834 = vmatprep.mubr.f32.mxu1 %v2648_v0  ;;  %1432 = vmatprep.mubr.f32.mxu0 %v2648_v0 }
  0x96   : > { %836 = vmatmul.mubr.f32.gmra.mrb[28].mxu1 %v2854_v1  ;;  %1434 = vmatmul.mubr.f32.gmra.mrb[30].mxu0 %v2864_v9 }
  0x97   : > { %841 = vmatprep.mubr.f32.mxu1 %v2648_v0  ;;  %1506 = vmatprep.mubr.f32.mxu0 %v2648_v0 }
  0x9a   : > { %843 = vmatmul.mubr.f32.gmra.mrb[30].mxu1 %v2864_v9  ;;  %1508 = vmatmul.mubr.f32.vlgmr.msra.gmra.mrb[0].mxu0 %v2707_v12 }
  0x9b   : > { %917 = vmatprep.mubr.f32.mxu1 %v2648_v0  ;;  %1513 = vmatprep.mubr.f32.mxu0 %v2648_v0 }
  0x9e   : > { %920 = vmatmul.mubr.f32.vlgmr.msra.gmra.mrb[0].mxu1 %v2720_v20  ;;  %1515 = vmatmul.mubr.f32.gmra.mrb[2].mxu0 %v2711_v15 }
  0x9f   : > { %925 = vmatprep.mubr.f32.mxu1 %v2648_v0  ;;  %1520 = vmatprep.mubr.f32.mxu0 %v2648_v0 }
  0xa2   : > { %928 = vmatmul.mubr.f32.gmra.mrb[2].mxu1 %v2728_v24  ;;  %1522 = vmatmul.mubr.f32.gmra.mrb[4].mxu0 %v2722_v22 }
  0xa3   : > { %933 = vmatprep.mubr.f32.mxu1 %v2648_v0  ;;  %1527 = vmatprep.mubr.f32.mxu0 %v2648_v0 }
  0xa6   : > { %936 = vmatmul.mubr.f32.gmra.mrb[4].mxu1 %v2735_v29  ;;  %1529 = vmatmul.mubr.f32.gmra.mrb[6].mxu0 %v2730_v25 }
  0xa7   : > { %941 = vmatprep.mubr.f32.mxu1 %v2648_v0  ;;  %1534 = vmatprep.mubr.f32.mxu0 %v2648_v0 }
  0xaa   : > { %944 = vmatmul.mubr.f32.gmra.mrb[6].mxu1 %v2739_v31  ;;  %1536 = vmatmul.mubr.f32.gmra.mrb[8].mxu0 %v2741_v32 }
  0xab   : > { %949 = vmatprep.mubr.f32.mxu1 %v2648_v0  ;;  %1541 = vmatprep.mubr.f32.mxu0 %v2648_v0 }
  0xae   : > { %952 = vmatmul.mubr.f32.gmra.mrb[8].mxu1 %v2755_v47  ;;  %1543 = vmatmul.mubr.f32.gmra.mrb[10].mxu0 %v2750_v43 }
  0xaf   : > { %957 = vmatprep.mubr.f32.mxu1 %v2648_v0  ;;  %1548 = vmatprep.mubr.f32.mxu0 %v2648_v0 }
  0xb2   : > { %960 = vmatmul.mubr.f32.gmra.mrb[10].mxu1 %v2762_v50  ;;  %1550 = vmatmul.mubr.f32.gmra.mrb[12].mxu0 %v2766_v54 }
  0xb3   : > { %965 = vmatprep.mubr.f32.mxu1 %v2648_v0  ;;  %1555 = vmatprep.mubr.f32.mxu0 %v2648_v0 }
  0xb6   : > { %968 = vmatmul.mubr.f32.gmra.mrb[12].mxu1 %v2775_v60  ;;  %1557 = vmatmul.mubr.f32.gmra.mrb[14].mxu0 %v2777_v61 }
  0xb7   : > { %973 = vmatprep.mubr.f32.mxu1 %v2648_v0  ;;  %1562 = vmatprep.mubr.f32.mxu0 %v2648_v0 }
  0xba   : > { %976 = vmatmul.mubr.f32.gmra.mrb[14].mxu1 %v2786_v4  ;;  %1564 = vmatmul.mubr.f32.gmra.mrb[16].mxu0 %v2788_v5 }
  0xbb   : > { %981 = vmatprep.mubr.f32.mxu1 %v2648_v0  ;;  %1569 = vmatprep.mubr.f32.mxu0 %v2648_v0 }
  0xbe   : > { %984 = vmatmul.mubr.f32.gmra.mrb[16].mxu1 %v2798_v14  ;;  %1571 = vmatmul.mubr.f32.gmra.mrb[18].mxu0 %v2800_v16 }
  0xbf   : > { %989 = vmatprep.mubr.f32.mxu1 %v2648_v0  ;;  %1576 = vmatprep.mubr.f32.mxu0 %v2648_v0 }
  0xc2   : > { %992 = vmatmul.mubr.f32.gmra.mrb[18].mxu1 %v2810_v27  ;;  %1578 = vmatmul.mubr.f32.gmra.mrb[20].mxu0 %v2805_v18 }
  0xc3   : > { %997 = vmatprep.mubr.f32.mxu1 %v2648_v0  ;;  %1583 = vmatprep.mubr.f32.mxu0 %v2648_v0 }
  0xc6   : > { %1000 = vmatmul.mubr.f32.gmra.mrb[20].mxu1 %v2817_v33  ;;  %1585 = vmatmul.mubr.f32.gmra.mrb[22].mxu0 %v2822_v38 }
  0xc7   : > { %1005 = vmatprep.mubr.f32.mxu1 %v2648_v0  ;;  %1590 = vmatprep.mubr.f32.mxu0 %v2648_v0 }
  0xca   : > { %1008 = vmatmul.mubr.f32.gmra.mrb[22].mxu1 %v2832_v45  ;;  %1592 = vmatmul.mubr.f32.gmra.mrb[24].mxu0 %v2827_v40 }
  0xcb   : > { %1013 = vmatprep.mubr.f32.mxu1 %v2648_v0  ;;  %1597 = vmatprep.mubr.f32.mxu0 %v2648_v0 }
  0xce   : > { %1016 = vmatmul.mubr.f32.gmra.mrb[24].mxu1 %v2839_v49  ;;  %1599 = vmatmul.mubr.f32.gmra.mrb[26].mxu0 %v2843_v55 }
  0xcf   : > { %1021 = vmatprep.mubr.f32.mxu1 %v2648_v0  ;;  %1604 = vmatprep.mubr.f32.mxu0 %v2648_v0 }
  0xd2   : > { %1024 = vmatmul.mubr.f32.gmra.mrb[26].mxu1 %v2852_v63  ;;  %1606 = vmatmul.mubr.f32.gmra.mrb[28].mxu0 %v2854_v1 }
  0xd3   : > { %1029 = vmatprep.mubr.f32.mxu1 %v2648_v0  ;;  %1611 = vmatprep.mubr.f32.mxu0 %v2648_v0 }
  0xd6   : > { %1032 = vmatmul.mubr.f32.gmra.mrb[28].mxu1 %v2862_v8  ;;  %1613 = vmatmul.mubr.f32.gmra.mrb[30].mxu0 %v2864_v9 }
  0xd7   : > { %1037 = vmatprep.mubr.f32.mxu1 %v2648_v0 }
  0xda   : > { %1040 = vmatmul.mubr.f32.gmra.mrb[30].mxu1 %v2871_v21 }
 0x16d   : > { %v1509_v11 = vpop.f32.mrb[0].mxu0 }
 0x16e   : > { %v1511_v12 = vpop.f32.mrb[1].mxu0 }
 0x171   : > { %v921_v15 = vpop.f32.mrb[0].mxu1  ;;  %v1516_v20 = vpop.f32.mrb[2].mxu0 }
 0x172   : > { %v2435_v19 = vadd.f32 %v1509_v11, %v921_v15  ;;  %v923_v22 = vpop.f32.mrb[1].mxu1  ;;  %v1518_v25 = vpop.f32.mrb[3].mxu0 }
 0x173   : > { %v2436_v24 = vadd.f32 %v1511_v12, %v923_v22 }
 0x174   : > { %v1619_v47 = vmax.f32 %v2435_v19, 0.0 }
 0x175   : > { %v929_v29 = vpop.f32.mrb[2].mxu1  ;;  %v1523_v32 = vpop.f32.mrb[4].mxu0  ;;  %v1620_v60 = vmax.f32 %v2436_v24, 0.0 }
 0x176   : > { %v2437_v31 = vadd.f32 %v1516_v20, %v929_v29  ;;  %v931_v43 = vpop.f32.mrb[3].mxu1  ;;  %v1525_v54 = vpop.f32.mrb[5].mxu0  ;;  %vm1683_vm2 = vcmp.lt.f32.partialorder %v1619_v47, inf }
 0x177   : > { %v2438_v50 = vadd.f32 %v1518_v25, %v931_v43  ;;  %vm1684_vm3 = vcmp.lt.f32.partialorder %v1620_v60, inf  ;;  %v3013_v38 = vsel %vm1683_vm2, %v1619_v47, inf }
 0x178   : > { %v1621_v18 = vmax.f32 %v2437_v31, 0.0  ;;  %v3015_v42 = vsel %vm1684_vm3, %v1620_v60, inf }
 0x179   : > { %v937_v61 = vpop.f32.mrb[4].mxu1  ;;  %v1530_v4 = vpop.f32.mrb[6].mxu0  ;;  %v1622_v33 = vmax.f32 %v2438_v50, 0.0 }
 0x17a   : > { %v2439_v0 = vadd.f32 %v1523_v32, %v937_v61  ;;  %v939_v5 = vpop.f32.mrb[5].mxu1  ;;  %v1532_v16 = vpop.f32.mrb[7].mxu0  ;;  %vm1685_vm6 = vcmp.lt.f32.partialorder %v1621_v18, inf }
 0x17b   : > { %v2440_v14 = vadd.f32 %v1525_v54, %v939_v5  ;;  %vm1686_vm7 = vcmp.lt.f32.partialorder %v1622_v33, inf  ;;  %v3025_v59 = vsel %vm1685_vm6, %v1621_v18, inf }
 0x17c   : > { %v1623_v27 = vmax.f32 %v2439_v0, 0.0  ;;  %v3029_v2 = vsel %vm1686_vm7, %v1622_v33, inf }
 0x17d   : > { %v1624_v36 = vmax.f32 %v2440_v14, 0.0  ;;  %v945_v37 = vpop.f32.mrb[6].mxu1  ;;  %v1537_v40 = vpop.f32.mrb[8].mxu0 }
 0x17e   : > { %vm1687_vm4 = vcmp.lt.f32.partialorder %v1623_v27, inf  ;;  %v2441_v39 = vadd.f32 %v1530_v4, %v945_v37  ;;  %v947_v41 = vpop.f32.mrb[7].mxu1  ;;  %v1539_v46 = vpop.f32.mrb[9].mxu0 }
 0x17f   : > { %v3017_v44 = vsel %vm1687_vm4, %v1623_v27, inf  ;;  %vm1688_vm5 = vcmp.lt.f32.partialorder %v1624_v36, inf  ;;  %v2442_v45 = vadd.f32 %v1532_v16, %v947_v41 }
 0x180   : > { %v1943_v48 = vmin.f32 %v3013_v38, %v3017_v44  ;;  %v3021_v49 = vsel %vm1688_vm5, %v1624_v36, inf  ;;  %v1625_v51 = vmax.f32 %v2441_v39, 0.0 }
 0x181   : > { %v1964_v52 = vmin.f32 %v3015_v42, %v3021_v49  ;;  %v1626_v53 = vmax.f32 %v2442_v45, 0.0  ;;  %v953_v55 = vpop.f32.mrb[8].mxu1  ;;  %v1544_v57 = vpop.f32.mrb[10].mxu0 }
 0x182   : > { %vm1689_vm8 = vcmp.lt.f32.partialorder %v1625_v51, inf  ;;  %v2443_v56 = vadd.f32 %v1537_v40, %v953_v55  ;;  %v955_v58 = vpop.f32.mrb[9].mxu1  ;;  %v1546_v1 = vpop.f32.mrb[11].mxu0 }
 0x183   : > { %v3027_v62 = vsel %vm1689_vm8, %v1625_v51, inf  ;;  %vm1690_vm9 = vcmp.lt.f32.partialorder %v1626_v53, inf  ;;  %v2444_v63 = vadd.f32 %v1539_v46, %v955_v58 }
 0x184   : > { %v1944_v3 = vmin.f32 %v3025_v59, %v3027_v62  ;;  %v3033_v6 = vsel %vm1690_vm9, %v1626_v53, inf  ;;  %v1627_v7 = vmax.f32 %v2443_v56, 0.0 }
 0x185   : > { %v1965_v8 = vmin.f32 %v3029_v2, %v3033_v6  ;;  %v1628_v9 = vmax.f32 %v2444_v63, 0.0  ;;  %v961_v10 = vpop.f32.mrb[10].mxu1  ;;  %v1551_v17 = vpop.f32.mrb[12].mxu0 }
 0x186   : > { %vm1691_vm10 = vcmp.lt.f32.partialorder %v1627_v7, inf  ;;  %v2445_v13 = vadd.f32 %v1544_v57, %v961_v10  ;;  %v963_v21 = vpop.f32.mrb[11].mxu1  ;;  %v1553_v28 = vpop.f32.mrb[13].mxu0 }
 0x187   : > { %v3037_v23 = vsel %vm1691_vm10, %v1627_v7, inf  ;;  %vm1692_vm11 = vcmp.lt.f32.partialorder %v1628_v9, inf  ;;  %v2446_v26 = vadd.f32 %v1546_v1, %v963_v21 }
 0x188   : > { %v1945_v30 = vmin.f32 %v1943_v48, %v3037_v23  ;;  %v3040_v34 = vsel %vm1692_vm11, %v1628_v9, inf  ;;  %v1629_v35 = vmax.f32 %v2445_v13, 0.0 }
 0x189   : > { %v1966_v11 = vmin.f32 %v1964_v52, %v3040_v34  ;;  %v1630_v12 = vmax.f32 %v2446_v26, 0.0  ;;  %v969_v15 = vpop.f32.mrb[12].mxu1  ;;  %v1558_v20 = vpop.f32.mrb[14].mxu0 }
 0x18a   : > { %vm1693_vm12 = vcmp.lt.f32.partialorder %v1629_v35, inf  ;;  %v2447_v19 = vadd.f32 %v1551_v17, %v969_v15  ;;  %v971_v22 = vpop.f32.mrb[13].mxu1  ;;  %v1560_v29 = vpop.f32.mrb[15].mxu0 }
 0x18b   : > { %v3043_v24 = vsel %vm1693_vm12, %v1629_v35, inf  ;;  %vm1694_vm13 = vcmp.lt.f32.partialorder %v1630_v12, inf  ;;  %v2448_v25 = vadd.f32 %v1553_v28, %v971_v22 }
 0x18c   : > { %v1946_v31 = vmin.f32 %v1944_v3, %v3043_v24  ;;  %v3046_v32 = vsel %vm1694_vm13, %v1630_v12, inf  ;;  %v1631_v43 = vmax.f32 %v2447_v19, 0.0 }
 0x18d   : > { %v1967_v47 = vmin.f32 %v1965_v8, %v3046_v32  ;;  %v1632_v50 = vmax.f32 %v2448_v25, 0.0  ;;  %v977_v54 = vpop.f32.mrb[14].mxu1  ;;  %v1565_v61 = vpop.f32.mrb[16].mxu0 }
 0x18e   : > { %vm1695_vm14 = vcmp.lt.f32.partialorder %v1631_v43, inf  ;;  %v2449_v60 = vadd.f32 %v1558_v20, %v977_v54  ;;  %v979_v0 = vpop.f32.mrb[15].mxu1  ;;  %v1567_v14 = vpop.f32.mrb[17].mxu0 }
 0x18f   : > { %v3049_v4 = vsel %vm1695_vm14, %v1631_v43, inf  ;;  %vm1696_vm15 = vcmp.lt.f32.partialorder %v1632_v50, inf  ;;  %v2450_v5 = vadd.f32 %v1560_v29, %v979_v0 }
 0x190   : > { %v1947_v16 = vmin.f32 %v1945_v30, %v3049_v4  ;;  %v3052_v18 = vsel %vm1696_vm15, %v1632_v50, inf  ;;  %v1633_v27 = vmax.f32 %v2449_v60, 0.0 }
 0x191   : > { %v1968_v33 = vmin.f32 %v1966_v11, %v3052_v18  ;;  %v1634_v36 = vmax.f32 %v2450_v5, 0.0  ;;  %v985_v37 = vpop.f32.mrb[16].mxu1  ;;  %v1572_v40 = vpop.f32.mrb[18].mxu0 }
 0x192   : > { %vm1697_vm0 = vcmp.lt.f32.partialorder %v1633_v27, inf  ;;  %v2451_v39 = vadd.f32 %v1565_v61, %v985_v37  ;;  %v987_v41 = vpop.f32.mrb[17].mxu1  ;;  %v1574_v48 = vpop.f32.mrb[19].mxu0 }
 0x193   : > { %v3055_v45 = vsel %vm1697_vm0, %v1633_v27, inf  ;;  %vm1698_vm1 = vcmp.lt.f32.partialorder %v1634_v36, inf  ;;  %v2452_v46 = vadd.f32 %v1567_v14, %v987_v41 }
 0x194   : > { %v1948_v51 = vmin.f32 %v1946_v31, %v3055_v45  ;;  %v3058_v52 = vsel %vm1698_vm1, %v1634_v36, inf  ;;  %v1635_v53 = vmax.f32 %v2451_v39, 0.0 }
 0x195   : > { %v1969_v55 = vmin.f32 %v1967_v47, %v3058_v52  ;;  %v1636_v56 = vmax.f32 %v2452_v46, 0.0  ;;  %v993_v57 = vpop.f32.mrb[18].mxu1  ;;  %v1579_v63 = vpop.f32.mrb[20].mxu0 }
 0x196   : > { %vm1699_vm2 = vcmp.lt.f32.partialorder %v1635_v53, inf  ;;  %v2453_v58 = vadd.f32 %v1572_v40, %v993_v57  ;;  %v995_v1 = vpop.f32.mrb[19].mxu1  ;;  %v1581_v8 = vpop.f32.mrb[21].mxu0 }
 0x197   : > { %v3061_v3 = vsel %vm1699_vm2, %v1635_v53, inf  ;;  %vm1700_vm3 = vcmp.lt.f32.partialorder %v1636_v56, inf  ;;  %v2454_v7 = vadd.f32 %v1574_v48, %v995_v1 }
 0x198   : > { %v1949_v9 = vmin.f32 %v1947_v16, %v3061_v3  ;;  %v3064_v10 = vsel %vm1700_vm3, %v1636_v56, inf  ;;  %v1637_v13 = vmax.f32 %v2453_v58, 0.0 }
 0x199   : > { %v1970_v17 = vmin.f32 %v1968_v33, %v3064_v10  ;;  %v1638_v21 = vmax.f32 %v2454_v7, 0.0  ;;  %v1001_v26 = vpop.f32.mrb[20].mxu1  ;;  %v1586_v30 = vpop.f32.mrb[22].mxu0 }
 0x19a   : > { %vm1701_vm4 = vcmp.lt.f32.partialorder %v1637_v13, inf  ;;  %v2455_v28 = vadd.f32 %v1579_v63, %v1001_v26  ;;  %v1003_v35 = vpop.f32.mrb[21].mxu1  ;;  %v1588_v15 = vpop.f32.mrb[23].mxu0 }
 0x19b   : > { %v3067_v11 = vsel %vm1701_vm4, %v1637_v13, inf  ;;  %vm1702_vm5 = vcmp.lt.f32.partialorder %v1638_v21, inf  ;;  %v2456_v12 = vadd.f32 %v1581_v8, %v1003_v35 }
 0x19c   : > { %v1950_v19 = vmin.f32 %v1948_v51, %v3067_v11  ;;  %v3070_v20 = vsel %vm1702_vm5, %v1638_v21, inf  ;;  %v1639_v22 = vmax.f32 %v2455_v28, 0.0 }
 0x19d   : > { %v1971_v25 = vmin.f32 %v1969_v55, %v3070_v20  ;;  %v1640_v29 = vmax.f32 %v2456_v12, 0.0  ;;  %v1009_v31 = vpop.f32.mrb[22].mxu1  ;;  %v1593_v47 = vpop.f32.mrb[24].mxu0 }
 0x19e   : > { %vm1703_vm6 = vcmp.lt.f32.partialorder %v1639_v22, inf  ;;  %v2457_v43 = vadd.f32 %v1586_v30, %v1009_v31  ;;  %v1011_v50 = vpop.f32.mrb[23].mxu1  ;;  %v1595_v61 = vpop.f32.mrb[25].mxu0 }
 0x19f   : > { %v3073_v54 = vsel %vm1703_vm6, %v1639_v22, inf  ;;  %vm1704_vm7 = vcmp.lt.f32.partialorder %v1640_v29, inf  ;;  %v2458_v60 = vadd.f32 %v1588_v15, %v1011_v50 }
 0x1a0   : > { %v1951_v0 = vmin.f32 %v1949_v9, %v3073_v54  ;;  %v3076_v5 = vsel %vm1704_vm7, %v1640_v29, inf  ;;  %v1641_v14 = vmax.f32 %v2457_v43, 0.0 }
 0x1a1   : > { %v1972_v16 = vmin.f32 %v1970_v17, %v3076_v5  ;;  %v1642_v27 = vmax.f32 %v2458_v60, 0.0  ;;  %v1017_v33 = vpop.f32.mrb[24].mxu1  ;;  %v1600_v37 = vpop.f32.mrb[26].mxu0 }
 0x1a2   : > { %vm1705_vm8 = vcmp.lt.f32.partialorder %v1641_v14, inf  ;;  %v2459_v36 = vadd.f32 %v1593_v47, %v1017_v33  ;;  %v1019_v39 = vpop.f32.mrb[25].mxu1  ;;  %v1602_v46 = vpop.f32.mrb[27].mxu0 }
 0x1a3   : > { %v3079_v40 = vsel %vm1705_vm8, %v1641_v14, inf  ;;  %vm1706_vm9 = vcmp.lt.f32.partialorder %v1642_v27, inf  ;;  %v2460_v41 = vadd.f32 %v1595_v61, %v1019_v39 }
 0x1a4   : > { %v1952_v48 = vmin.f32 %v1950_v19, %v3079_v40  ;;  %v3082_v51 = vsel %vm1706_vm9, %v1642_v27, inf  ;;  %v1643_v53 = vmax.f32 %v2459_v36, 0.0 }
 0x1a5   : > { %v1973_v55 = vmin.f32 %v1971_v25, %v3082_v51  ;;  %v1644_v56 = vmax.f32 %v2460_v41, 0.0  ;;  %v1025_v57 = vpop.f32.mrb[26].mxu1  ;;  %v1607_v63 = vpop.f32.mrb[28].mxu0 }
 0x1a6   : > { %vm1707_vm10 = vcmp.lt.f32.partialorder %v1643_v53, inf  ;;  %v2461_v58 = vadd.f32 %v1600_v37, %v1025_v57  ;;  %v1027_v1 = vpop.f32.mrb[27].mxu1  ;;  %v1609_v9 = vpop.f32.mrb[29].mxu0 }
 0x1a7   : > { %v3085_v7 = vsel %vm1707_vm10, %v1643_v53, inf  ;;  %vm1708_vm11 = vcmp.lt.f32.partialorder %v1644_v56, inf  ;;  %v2462_v8 = vadd.f32 %v1602_v46, %v1027_v1 }
 0x1a8   : > { %v1953_v13 = vmin.f32 %v1951_v0, %v3085_v7  ;;  %v3088_v17 = vsel %vm1708_vm11, %v1644_v56, inf  ;;  %v1645_v21 = vmax.f32 %v2461_v58, 0.0  ;;  %v1985_v58 = vlaneseq }
 0x1a9   : > { %v1974_v26 = vmin.f32 %v1972_v16, %v3088_v17  ;;  %v1646_v28 = vmax.f32 %v2462_v8, 0.0  ;;  %v1033_v30 = vpop.f32.mrb[28].mxu1  ;;  %v1614_v12 = vpop.f32.mrb[30].mxu0 }
 0x1aa   : > { %vm1709_vm12 = vcmp.lt.f32.partialorder %v1645_v21, inf  ;;  %v2463_v35 = vadd.f32 %v1607_v63, %v1033_v30  ;;  %v1035_v15 = vpop.f32.mrb[29].mxu1  ;;  %v1616_v25 = vpop.f32.mrb[31].mxu0 }
 0x1ab   : > { %v3091_v19 = vsel %vm1709_vm12, %v1645_v21, inf  ;;  %vm1710_vm13 = vcmp.lt.f32.partialorder %v1646_v28, inf  ;;  %v2464_v22 = vadd.f32 %v1609_v9, %v1035_v15 }
 0x1ac   : > { %v1954_v29 = vmin.f32 %v1952_v48, %v3091_v19  ;;  %v3094_v31 = vsel %vm1710_vm13, %v1646_v28, inf  ;;  %v1647_v43 = vmax.f32 %v2463_v35, 0.0 }
 0x1ad   : > { %v1975_v47 = vmin.f32 %v1973_v55, %v3094_v31  ;;  %v1648_v50 = vmax.f32 %v2464_v22, 0.0  ;;  %v1041_v60 = vpop.f32.mrb[30].mxu1 }
 0x1ae   : > { %vm1711_vm14 = vcmp.lt.f32.partialorder %v1647_v43, inf  ;;  %v2465_v61 = vadd.f32 %v1614_v12, %v1041_v60  ;;  %v1043_v0 = vpop.f32.mrb[31].mxu1 }
 0x1af   : > { %v3097_v14 = vsel %vm1711_vm14, %v1647_v43, inf  ;;  %vm1712_vm15 = vcmp.lt.f32.partialorder %v1648_v50, inf  ;;  %v2466_v16 = vadd.f32 %v1616_v25, %v1043_v0 }
 0x1b0   : > { %v1955_v27 = vmin.f32 %v1953_v13, %v3097_v14  ;;  %v3100_v33 = vsel %vm1712_vm15, %v1648_v50, inf  ;;  %v1649_v36 = vmax.f32 %v2465_v61, 0.0  ;;  %v3109_v13 = vshrl.u32 %v1985_v58, 7 }
 0x1b1   : > { %v1976_v37 = vmin.f32 %v1974_v26, %v3100_v33  ;;  %v1650_v39 = vmax.f32 %v2466_v16, 0.0 }
 0x1b2   : > { %vm1713_vm0 = vcmp.lt.f32.partialorder %v1649_v36, inf  ;;  %v3112_v35 = vadd.s32 8, %v3109_v13  ;;  %v3115_v12 = vadd.s32 16, %v3109_v13  ;;  %v3118_v15 = vadd.s32 24, %v3109_v13 }
 0x1b3   : > { %v3103_v41 = vsel %vm1713_vm0, %v1649_v36, inf  ;;  %vm1714_vm1 = vcmp.lt.f32.partialorder %v1650_v39, inf  ;;  %v3121_v22 = vadd.s32 32, %v3109_v13  ;;  %v3124_v25 = vadd.s32 40, %v3109_v13 }
 0x1b4   : > { %v1956_v46 = vmin.f32 %v1954_v29, %v3103_v41  ;;  %v3106_v48 = vsel %vm1714_vm1, %v1650_v39, inf  ;;  %v3127_v29 = vadd.s32 48, %v3109_v13  ;;  %v3135_v50 = vadd.s32 64, %v3109_v13 }
 0x1b5   : > { %v1977_v53 = vmin.f32 %v1975_v47, %v3106_v48  ;;  %v3132_v47 = vadd.s32 56, %v3109_v13  ;;  %v3138_v60 = vadd.s32 72, %v3109_v13  ;;  %v3141_v61 = vadd.s32 80, %v3109_v13 }
 0x1b6   : > { %v1957_v55 = vmin.f32 %v1955_v27, %v1956_v46  ;;  %v3144_v0 = vadd.s32 88, %v3109_v13  ;;  %v3147_v16 = vadd.s32 96, %v3109_v13  ;;  %v3182_v36 = vadd.s32 104, %v3109_v13 }
 0x1b7   : > { %v1978_v56 = vmin.f32 %v1976_v37, %v1977_v53  ;;  %v3185_v37 = vadd.s32 112, %v3109_v13  ;;  %v3188_v39 = vadd.s32 120, %v3109_v13 }
 0x1b8   : > { %v1958_v57 = vrot.slane %v1957_v55, 4 }
 0x1b9   : > { %v1979_v63 = vrot.slane %v1978_v56, 4 }
 0x1ba   : > { %v1959_v1 = vmin.f32 %v1957_v55, %v1958_v57 }
 0x1bb   : > { %v1980_v8 = vmin.f32 %v1978_v56, %v1979_v63 }
 0x1bc   : > { %v1960_v9 = vrot.slane %v1959_v1, 2 }
 0x1bd   : > { %v1981_v21 = vrot.slane %v1980_v8, 2 }
 0x1be   : > { %v1961_v26 = vmin.f32 %v1959_v1, %v1960_v9 }
 0x1bf   : > { %v1982_v28 = vmin.f32 %v1980_v8, %v1981_v21 }
 0x1c0   : > { %v1962_v30 = vrot.slane %v1961_v26, 1 }
 0x1c1   : > { %v1983_v27 = vrot.slane %v1982_v28, 1 }
 0x1c2   : > { %v3129_v43 = vmin.f32 %v1961_v26, %v1962_v30 }
 0x1c3   : > { %v3190_v46 = vmin.f32 %v1982_v28, %v1983_v27 }
 0x1c4   : > { %vm2098_vm2 = vcmp.le.f32.partialorder %v3013_v38, %v3129_v43  ;;  %vm2100_vm3 = vcmp.le.f32.partialorder %v3025_v59, %v3129_v43  ;;  %vm2102_vm4 = vcmp.le.f32.partialorder %v3017_v44, %v3129_v43  ;;  %vm2104_vm5 = vcmp.le.f32.partialorder %v3027_v62, %v3129_v43 }
 0x1c5   : > { %vm2106_vm6 = vcmp.le.f32.partialorder %v3037_v23, %v3129_v43  ;;  %vm2108_vm7 = vcmp.le.f32.partialorder %v3043_v24, %v3129_v43  ;;  %vm2110_vm8 = vcmp.le.f32.partialorder %v3049_v4, %v3129_v43  ;;  %vm2112_vm9 = vcmp.le.f32.partialorder %v3055_v45, %v3129_v43 }
 0x1c6   : > { %vm2114_vm10 = vcmp.le.f32.partialorder %v3061_v3, %v3129_v43  ;;  %vm2116_vm11 = vcmp.le.f32.partialorder %v3067_v11, %v3129_v43  ;;  %vm2118_vm12 = vcmp.le.f32.partialorder %v3073_v54, %v3129_v43  ;;  %vm2120_vm13 = vcmp.le.f32.partialorder %v3079_v40, %v3129_v43 }
 0x1c7   : > { %vm2122_vm14 = vcmp.le.f32.partialorder %v3085_v7, %v3129_v43  ;;  %vm2124_vm15 = vcmp.le.f32.partialorder %v3091_v19, %v3129_v43  ;;  %vm2126_vm0 = vcmp.le.f32.partialorder %v3097_v14, %v3129_v43  ;;  %vm2128_vm1 = vcmp.le.f32.partialorder %v3103_v41, %v3129_v43 }
 0x1c8   : > { %v2130_v53 = vsel %vm2098_vm2, %v3109_v13, 1073741824  ;;  %v2132_v55 = vsel %vm2100_vm3, %v3112_v35, 1073741824  ;;  %v2134_v56 = vsel %vm2102_vm4, %v3115_v12, 1073741824  ;;  %v2136_v57 = vsel %vm2104_vm5, %v3118_v15, 1073741824 }
 0x1c9   : > { %v2138_v38 = vsel %vm2106_vm6, %v3121_v22, 1073741824  ;;  %v2140_v59 = vsel %vm2108_vm7, %v3124_v25, 1073741824  ;;  %v2142_v44 = vsel %vm2110_vm8, %v3127_v29, 1073741824  ;;  %v2144_v62 = vsel %vm2112_vm9, %v3132_v47, 1073741824 }
 0x1ca   : > { %v2146_v23 = vsel %vm2114_vm10, %v3135_v50, 1073741824  ;;  %v2148_v24 = vsel %vm2116_vm11, %v3138_v60, 1073741824  ;;  %v2150_v4 = vsel %vm2118_vm12, %v3141_v61, 1073741824  ;;  %v2152_v45 = vsel %vm2120_vm13, %v3144_v0, 1073741824 }
 0x1cb   : > { %v2154_v3 = vsel %vm2122_vm14, %v3147_v16, 1073741824  ;;  %vm2162_vm2 = vcmp.lt.s32.totalorder %v2130_v53, %v2134_v56  ;;  %vm2164_vm3 = vcmp.lt.s32.totalorder %v2132_v55, %v2136_v57  ;;  %2620 = vrsqrt.f32 %v3129_v43 }
 0x1cc   : > { %v2156_v11 = vsel %vm2124_vm15, %v3182_v36, 1073741824  ;;  %v2158_v54 = vsel %vm2126_vm0, %v3185_v37, 1073741824  ;;  %v2163_v40 = vsel %vm2162_vm2, %v2130_v53, %v2134_v56  ;;  %v2165_v58 = vsel %vm2164_vm3, %v2132_v55, %v2136_v57 }
 0x1cd   : > { %vm2166_vm4 = vcmp.lt.s32.totalorder %v2163_v40, %v2138_v38  ;;  %vm2168_vm5 = vcmp.lt.s32.totalorder %v2165_v58, %v2140_v59  ;;  %vm2099_vm6 = vcmp.le.f32.partialorder %v3015_v42, %v3190_v46  ;;  %vm2101_vm7 = vcmp.le.f32.partialorder %v3029_v2, %v3190_v46 }
 0x1ce   : > { %v2167_v7 = vsel %vm2166_vm4, %v2163_v40, %v2138_v38  ;;  %v2169_v63 = vsel %vm2168_vm5, %v2165_v58, %v2140_v59  ;;  %vm2103_vm8 = vcmp.le.f32.partialorder %v3021_v49, %v3190_v46  ;;  %vm2105_vm9 = vcmp.le.f32.partialorder %v3033_v6, %v3190_v46 }
 0x1cf   : > { %vm2170_vm10 = vcmp.lt.s32.totalorder %v2167_v7, %v2142_v44  ;;  %vm2172_vm11 = vcmp.lt.s32.totalorder %v2169_v63, %v2144_v62  ;;  %vm2107_vm12 = vcmp.le.f32.partialorder %v3040_v34, %v3190_v46  ;;  %vm2109_vm13 = vcmp.le.f32.partialorder %v3046_v32, %v3190_v46 }
 0x1d0   : > { %v2171_v19 = vsel %vm2170_vm10, %v2167_v7, %v2142_v44  ;;  %v2173_v14 = vsel %vm2172_vm11, %v2169_v63, %v2144_v62  ;;  %vm2117_vm4 = vcmp.le.f32.partialorder %v3070_v20, %v3190_v46  ;;  %vm2125_vm3 = vcmp.le.f32.partialorder %v3094_v31, %v3190_v46 }
 0x1d1   : > { %vm2174_vm0 = vcmp.lt.s32.totalorder %v2171_v19, %v2146_v23  ;;  %vm2176_vm2 = vcmp.lt.s32.totalorder %v2173_v14, %v2148_v24  ;;  %v2160_v28 = vsel %vm2128_vm1, %v3188_v39, 1073741824  ;;  %vm2242_vm15 = vcmp.eq.f32.partialorder %v3129_v43, inf }
 0x1d2   : > { %v2175_v1 = vsel %vm2174_vm0, %v2171_v19, %v2146_v23  ;;  %v2177_v8 = vsel %vm2176_vm2, %v2173_v14, %v2148_v24  ;;  %vm2127_vm0 = vcmp.le.f32.partialorder %v3100_v33, %v3190_v46  ;;  %v2245_v41 = vand.u32 2147483648, %v3129_v43 }
 0x1d3   : > { %vm2178_vm11 = vcmp.lt.s32.totalorder %v2175_v1, %v2150_v4  ;;  %vm2180_vm14 = vcmp.lt.s32.totalorder %v2177_v8, %v2152_v45  ;;  %v2131_v55 = vsel %vm2099_vm6, %v3109_v13, 1073741824  ;;  %v2133_v59 = vsel %vm2101_vm7, %v3112_v35, 1073741824 }
 0x1d4   : > { %v2179_v9 = vsel %vm2178_vm11, %v2175_v1, %v2150_v4  ;;  %v2181_v21 = vsel %vm2180_vm14, %v2177_v8, %v2152_v45  ;;  %vm2244_vm14 = vcmp.eq.f32.partialorder %v3129_v43, 0.0  ;;  %v2135_v62 = vsel %vm2103_vm8, %v3115_v12, 1073741824 }
 0x1d5   : > { %v2621_v26 = vpop.eup %2620  ;;  %vm2182_vm10 = vcmp.lt.s32.totalorder %v2179_v9, %v2154_v3  ;;  %vm2184_vm5 = vcmp.lt.s32.totalorder %v2181_v21, %v2156_v11  ;;  %v2137_v42 = vsel %vm2105_vm9, %v3118_v15, 1073741824  ;;  %v2139_v2 = vsel %vm2107_vm12, %v3121_v22, 1073741824 }
 0x1d6   : > { %v2183_v30 = vsel %vm2182_vm10, %v2179_v9, %v2154_v3  ;;  %v2185_v27 = vsel %vm2184_vm5, %v2181_v21, %v2156_v11  ;;  %v2241_v53 = vmul.f32 %v2621_v26, %v3129_v43  ;;  %v2141_v35 = vsel %vm2109_vm13, %v3124_v25, 1073741824 }
 0x1d7   : > { %vm2186_vm11 = vcmp.lt.s32.totalorder %v2183_v30, %v2158_v54  ;;  %vm2188_vm2 = vcmp.lt.s32.totalorder %v2185_v27, %v2160_v28  ;;  %vm2201_vm6 = vcmp.lt.s32.totalorder %v2131_v55, %v2135_v62  ;;  %vm2203_vm7 = vcmp.lt.s32.totalorder %v2133_v59, %v2137_v42 }
 0x1d8   : > { %v2187_v56 = vsel %vm2186_vm11, %v2183_v30, %v2158_v54  ;;  %v2189_v57 = vsel %vm2188_vm2, %v2185_v27, %v2160_v28  ;;  %v2243_v38 = vsel %vm2242_vm15, %v3129_v43, %v2241_v53  ;;  %v2202_v49 = vsel %vm2201_vm6, %v2131_v55, %v2135_v62 }
 0x1d9   : > { %vm2190_vm1 = vcmp.lt.s32.totalorder %v2187_v56, %v2189_v57  ;;  %v2246_v44 = vsel %vm2244_vm14, %v2245_v41, %v2243_v38  ;;  %v2204_v12 = vsel %vm2203_vm7, %v2133_v59, %v2137_v42  ;;  %2622 = vrsqrt.f32 %v3190_v46 }
 0x1da   : > { %v2191_v13 = vsel %vm2190_vm1, %v2187_v56, %v2189_v57  ;;  %2254 = vst [vmem:[%s3296_s26] sm:$0xff] %v2246_v44  ;;  %vm3393_vm9 = vcmp.le.f32.partialorder %v3052_v18, %v3190_v46  ;;  %vm2205_vm15 = vcmp.lt.s32.totalorder %v2202_v49, %v2139_v2  ;;  %vm2207_vm12 = vcmp.lt.s32.totalorder %v2204_v12, %v2141_v35 }
 0x1db   : > { %v2192_v43 = vrot.slane %v2191_v13, 4  ;;  %v2143_v15 = vsel %vm3393_vm9, %v3127_v29, 1073741824  ;;  %vm3394_vm13 = vcmp.le.f32.partialorder %v3058_v52, %v3190_v46  ;;  %v2206_v22 = vsel %vm2205_vm15, %v2202_v49, %v2139_v2 }
 0x1dc   : > { %v2145_v32 = vsel %vm3394_vm13, %v3132_v47, 1073741824  ;;  %v2208_v25 = vsel %vm2207_vm12, %v2204_v12, %v2141_v35  ;;  %vm3395_vm5 = vcmp.le.f32.partialorder %v3064_v10, %v3190_v46  ;;  %vm2209_vm10 = vcmp.lt.s32.totalorder %v2206_v22, %v2143_v15 }
 0x1dd   : > { %vm2193_vm8 = vcmp.lt.s32.totalorder %v2191_v13, %v2192_v43  ;;  %v2147_v23 = vsel %vm3395_vm5, %v3135_v50, 1073741824  ;;  %vm2211_vm2 = vcmp.lt.s32.totalorder %v2208_v25, %v2145_v32  ;;  %v2149_v18 = vsel %vm2117_vm4, %v3138_v60, 1073741824 }
 0x1de   : > { %v2194_v6 = vsel %vm2193_vm8, %v2191_v13, %v2192_v43  ;;  %v2210_v29 = vsel %vm2209_vm10, %v2206_v22, %v2143_v15  ;;  %v2212_v24 = vsel %vm2211_vm2, %v2208_v25, %v2145_v32  ;;  %vm3396_vm11 = vcmp.le.f32.partialorder %v3076_v5, %v3190_v46 }
 0x1df   : > { %v2195_v34 = vrot.slane %v2194_v6, 2  ;;  %v2151_v47 = vsel %vm3396_vm11, %v3141_v61, 1073741824  ;;  %vm2213_vm1 = vcmp.lt.s32.totalorder %v2210_v29, %v2147_v23  ;;  %vm2215_vm6 = vcmp.lt.s32.totalorder %v2212_v24, %v2149_v18 }
 0x1e0   : > { %vm3397_vm7 = vcmp.le.f32.partialorder %v3082_v51, %v3190_v46  ;;  %v2214_v4 = vsel %vm2213_vm1, %v2210_v29, %v2147_v23  ;;  %v2216_v45 = vsel %vm2215_vm6, %v2212_v24, %v2149_v18  ;;  %vm3398_vm4 = vcmp.le.f32.partialorder %v3088_v17, %v3190_v46 }
 0x1e1   : > { %vm2196_vm14 = vcmp.lt.s32.totalorder %v2194_v6, %v2195_v34  ;;  %v2153_v50 = vsel %vm3397_vm7, %v3144_v0, 1073741824  ;;  %v2155_v20 = vsel %vm3398_vm4, %v3147_v16, 1073741824  ;;  %vm2217_vm8 = vcmp.lt.s32.totalorder %v2214_v4, %v2151_v47 }
 0x1e2   : > { %v2197_v52 = vsel %vm2196_vm14, %v2194_v6, %v2195_v34  ;;  %vm2219_vm9 = vcmp.lt.s32.totalorder %v2216_v45, %v2153_v50  ;;  %v2157_v5 = vsel %vm2125_vm3, %v3182_v36, 1073741824  ;;  %v2218_v51 = vsel %vm2217_vm8, %v2214_v4, %v2151_v47 }
 0x1e3   : > { %v2198_v10 = vrot.slane %v2197_v52, 1  ;;  %v2220_v60 = vsel %vm2219_vm9, %v2216_v45, %v2153_v50  ;;  %vm2221_vm12 = vcmp.lt.s32.totalorder %v2218_v51, %v2155_v20  ;;  %v2623_v0 = vpop.eup %2622  ;;  %v2159_v17 = vsel %vm2127_vm0, %v3185_v37, 1073741824 }
 0x1e4   : > { %vm2223_vm13 = vcmp.lt.s32.totalorder %v2220_v60, %v2157_v5  ;;  %vm3399_vm5 = vcmp.le.f32.partialorder %v3106_v48, %v3190_v46  ;;  %v2222_v31 = vsel %vm2221_vm12, %v2218_v51, %v2155_v20  ;;  %v2248_v3 = vmul.f32 %v2623_v0, %v3190_v46 }
 0x1e5   : > { %vm2199_vm15 = vcmp.lt.s32.totalorder %v2197_v52, %v2198_v10  ;;  %v2161_v16 = vsel %vm3399_vm5, %v3188_v39, 1073741824  ;;  %v2224_v36 = vsel %vm2223_vm13, %v2220_v60, %v2157_v5  ;;  %vm2225_vm3 = vcmp.lt.s32.totalorder %v2222_v31, %v2159_v17 }
 0x1e6   : > { %v2200_v61 = vsel %vm2199_vm15, %v2197_v52, %v2198_v10  ;;  %vm2227_vm10 = vcmp.lt.s32.totalorder %v2224_v36, %v2161_v16  ;;  %v2226_v11 = vsel %vm2225_vm3, %v2222_v31, %v2159_v17  ;;  %vm2249_vm2 = vcmp.eq.f32.partialorder %v3190_v46, inf }
 0x1e7   : > { %2256 = vst [vmem:[%s3354_s29] sm:$0xff] %v2200_v61  ;;  %v2228_v54 = vsel %vm2227_vm10, %v2224_v36, %v2161_v16  ;;  %v2252_v40 = vand.u32 2147483648, %v3190_v46  ;;  %v2250_v33 = vsel %vm2249_vm2, %v3190_v46, %v2248_v3  ;;  %vm2251_vm14 = vcmp.eq.f32.partialorder %v3190_v46, 0.0 }
 0x1e8   : > { %vm2229_vm0 = vcmp.lt.s32.totalorder %v2226_v11, %v2228_v54 }
 0x1e9   : > { %v2230_v48 = vsel %vm2229_vm0, %v2226_v11, %v2228_v54  ;;  %v2253_v37 = vsel %vm2251_vm14, %v2252_v40, %v2250_v33 }
 0x1ea   : > { %v2231_v39 = vrot.slane %v2230_v48, 4  ;;  %2255 = vst [vmem:[%s3296_s26 + $0x8] sm:$0xff] %v2253_v37 }
 0x1ec   : > { %vm2232_vm11 = vcmp.lt.s32.totalorder %v2230_v48, %v2231_v39 }
 0x1ed   : > { %v2233_v58 = vsel %vm2232_vm11, %v2230_v48, %v2231_v39 }
 0x1ee   : > { %v2234_v7 = vrot.slane %v2233_v58, 2 }
 0x1f0   : > { %vm2235_vm1 = vcmp.lt.s32.totalorder %v2233_v58, %v2234_v7 }
 0x1f1   : > { %v2236_v63 = vsel %vm2235_vm1, %v2233_v58, %v2234_v7 }
 0x1f2   : > { %v2237_v19 = vrot.slane %v2236_v63, 1 }
 0x1f4   : > { %vm2238_vm6 = vcmp.lt.s32.totalorder %v2236_v63, %v2237_v19 }
 0x1f5   : > { %v2239_v14 = vsel %vm2238_vm6, %v2236_v63, %v2237_v19 }
 0x1f6   : > { %2257 = vst [vmem:[%s3354_s29 + $0x8] sm:$0xff] %v2239_v14 }
 0x1f7 PF: > { %s14_s14 = sadd.s32 1, %s2646_s14   ;;  %s3400_s12 = smov %s2642_s13 }
 0x1f8   : > { %p11_p5 = scmp.ge.s32.totalorder %s14_s14, 4   ;;  %s3401_s13 = smov %s3403_s15 }
 0x1fa   :  { %13 = sbr.rel (!%p11_p5) target bundleno = 2 (0x2), region = 81 }

</bundles_post_ra>
